<compile_context>
chip_gen: v6e
topology: v6e:2x2x1
jax: 0.10.0
libtpu: 0.0.40
codegen_flags: <defaults>
</compile_context>

<pallas_src>
import functools

import jax
import jax.numpy as jnp
from jax.experimental import pallas as pl
from jax.experimental.pallas import tpu as pltpu


def _round_up(x, m):
    return ((x + m - 1) // m) * m


def _vmem_capacity_bytes():
    """Physical VMEM per TensorCore; conservative fallback if the query fails."""
    try:
        info = pltpu.get_tpu_info()
        cap = getattr(info, "vmem_capacity_bytes", None)
        if cap:
            return int(cap)
    except Exception:
        pass
    return 64 * 1024 * 1024   # v7x-sized fallback (smallest of v5e/v6e/v7x)


def _filter_long_kernel(user_ref, items_ref, time_ref, wfil_ref, wqk_ref, v_ref,
                        out_ref, *, alpha1, alpha2, alpha3):
    # user_ref: (1, UB, D)       items_ref/time_ref/wfil_ref: (UB, S_pad, D)
    # wqk_ref:  (D, C)           v_ref: (C, D)                out_ref: (1, UB, D)
    ub, s, d = items_ref.shape
    c = wqk_ref.shape[-1]
    f32 = jnp.float32
    mxu_dtype = wqk_ref.dtype          # f32 (test) or bf16 (production path)
    prec = (jax.lax.Precision.HIGHEST if mxu_dtype == jnp.float32
            else jax.lax.Precision.DEFAULT)

    u = user_ref[0].astype(f32)                                     # (UB, D)
    # Hoist the user broadcast once; reused for `short` and `coeff`
    # (JAX does not CSE broadcast_in_dim).
    u_b = jnp.broadcast_to(u[:, None, :], (ub, s, d))               # (UB, S, D)

    # Sequence slabs may arrive in bf16 (HBM/DMA format); widen on the VPU
    # (mandatory on v5e, which has no bf16 VALU).
    short = u_b + items_ref[...].astype(f32) + time_ref[...].astype(f32)
    short2 = short.reshape(ub * s, d)        # free: S_pad % 8 == 0, D unchanged

    # scores = short @ (Wq @ K^T / sqrt(D)); the user-independent factor is
    # hoisted to the wrapper, leaving one (UB*S, D) x (D, C) MXU matmul.
    scores = jnp.dot(short2.astype(mxu_dtype), wqk_ref[...],
                     preferred_element_type=f32, precision=prec)    # (UB*S, C)

    v_rows = v_ref[...].astype(f32)                                 # (C, D)
    if c <= 8:
        # Tiny cluster count: unrolled C-way softmax on (M, 1) columns, and
        # shorted = sum_c attn_c * V[c] as VPU multiply-adds.  Avoids the
        # badly-shaped K=C MXU contraction and near-empty lane reductions.
        cols = [scores[:, i:i + 1] for i in range(c)]               # C x (M, 1)
        m = cols[0]
        for col in cols[1:]:
            m = jnp.maximum(m, col)
        ps = [jnp.exp(col - m) for col in cols]
        denom = ps[0]
        for p in ps[1:]:
            denom = denom + p
        inv = pl.reciprocal(denom, approx=False)                    # (M, 1) exact
        shorted = (ps[0] * inv) * v_rows[0:1, :]                    # (M, D)
        for i in range(1, c):
            shorted = shorted + (ps[i] * inv) * v_rows[i:i + 1, :]
    else:
        # Generic path (large production C: pad C to a multiple of 128 and
        # mask padded score columns to -inf in the wrapper for lane density).
        scores = scores - jnp.max(scores, axis=-1, keepdims=True)
        p = jnp.exp(scores)
        attn = p * pl.reciprocal(jnp.sum(p, axis=-1, keepdims=True), approx=False)
        shorted = jnp.dot(attn.astype(mxu_dtype), v_ref[...],
                          preferred_element_type=f32, precision=prec)

    shorted = shorted.reshape(ub, s, d)                             # (UB, S, D)

    # Reassociated filter product (exact math):
    #   new_u = u @ (shorted^T @ wfil)  ==  (sum_d u*shorted) @ wfil
    coeff = jnp.sum(u_b * shorted, axis=-1, keepdims=True)          # (UB, S, 1)
    new_u = jnp.sum(coeff * wfil_ref[...].astype(f32), axis=1)      # (UB, D)

    out_ref[0] = (alpha3 * (alpha1 * u + alpha2 * new_u)).astype(out_ref.dtype)


def filter_long_user_mix(user_embedding, item_seq_embs, time_embs, w_filters,
                         cluster_emb, Wq, Wk, Wv, alpha1, alpha2, alpha3,
                         *, user_block=None, matmul_dtype=jnp.float32,
                         storage_dtype=jnp.float32, seq_buffers=2):
    """Returns alpha3 * user_shorted_intent, shape (U, D)."""
    U, S, D = item_seq_embs.shape
    C = cluster_emb.shape[0]
    f32 = jnp.float32
    hi = jax.lax.Precision.HIGHEST

    # ---- Hoist user-independent projections out of the kernel (run once in
    # XLA, pinned to full-precision f32 regardless of the caller's default).
    K = jnp.dot(cluster_emb.astype(f32), Wk.astype(f32), precision=hi)      # (C, D)
    V = jnp.dot(cluster_emb.astype(f32), Wv.astype(f32), precision=hi)      # (C, D)
    # scores = (short @ Wq) @ K^T / sqrt(D) == short @ Wqk  (associativity);
    # folds the 1/sqrt(D) scale and the K^T transpose into the wrapper.
    Wqk = jnp.dot(Wq.astype(f32), K.T, precision=hi) / jnp.sqrt(f32(D))     # (D, C)
    V = V.astype(matmul_dtype)
    Wqk = Wqk.astype(matmul_dtype)

    S_pad = _round_up(S, 8)
    lanes = _round_up(D, 128)            # D=32 last dim occupies full 128-lane vregs
    seq_item_bytes = jnp.dtype(storage_dtype).itemsize
    n_buf = max(2, int(seq_buffers))

    vmem_cap = _vmem_capacity_bytes()
    # ~48 MiB budget on v7x (64 MiB/TC), ~96 MiB on v5e/v6e (128 MiB/TC).
    vmem_budget = min(int(0.75 * vmem_cap), 100 * 1024 * 1024)

    if user_block is None:
        # VMEM-budgeted block: n_buf-buffered sequence slabs (lane-padded) +
        # double-buffered user/output rows + f32 intermediates headroom
        # (short / shorted / broadcast user).
        per_user = (3 * S_pad * lanes * seq_item_bytes * n_buf
                    + 2 * 2 * lanes * 4
                    + 4 * S_pad * lanes * 4)
        ub = max(8, (vmem_budget // per_user) // 8 * 8)
        ub = min(ub, 1024, _round_up(U, 8))
        if vmem_cap <= 64 * 1024 * 1024 and U >= 16:
            # v7x-like chip (2 TensorCores): keep at least 2 parallel grid
            # steps when there are enough users so both cores get work.
            ub = min(ub, _round_up(pl.cdiv(U, 2), 8))
        user_block = ub

    U_pad = _round_up(U, user_block)
    G = U_pad // user_block

    def _pad(x, rows, seq=None):
        pads = [(0, rows - x.shape[0])] + [(0, 0)] * (x.ndim - 1)
        if seq is not None:
            pads[1] = (0, seq - x.shape[1])
        return jnp.pad(x, pads)

    # The three (U, S, D) slabs are essentially all of the HBM traffic; keep
    # them in `storage_dtype` (bf16 in production) and widen inside the kernel.
    items_p = _pad(item_seq_embs.astype(storage_dtype), U_pad, S_pad)
    time_p = _pad(time_embs.astype(storage_dtype), U_pad, S_pad)
    # Zero-padded w_filters rows => padded sequence positions contribute
    # exactly 0 to new_u (mathematically inert padding).
    wfil_p = _pad(w_filters.astype(storage_dtype), U_pad, S_pad)
    user_p = _pad(user_embedding.astype(f32), U_pad).reshape(G, user_block, D)

    kernel = functools.partial(
        _filter_long_kernel,
        alpha1=float(alpha1), alpha2=float(alpha2), alpha3=float(alpha3))

    rows = U_pad * S_pad
    cost = pl.CostEstimate(
        flops=(2 * rows * D * C          # scores matmul
               + 2 * rows * C * D        # attn-weighted V accumulation
               + 4 * rows * D            # coeff + new_u mul/reduce
               + 3 * rows * D),          # short = u + items + time
        transcendentals=rows * C,        # softmax exp
        bytes_accessed=(3 * rows * D * seq_item_bytes          # items/time/wfil
                        + 2 * U_pad * D * 4                    # user in + out
                        + 2 * C * D * jnp.dtype(matmul_dtype).itemsize),
    )

    seq_spec_kwargs = {}
    if n_buf != 2:
        seq_spec_kwargs["pipeline_mode"] = pl.Buffered(n_buf)

    def seq_spec():
        return pl.BlockSpec((user_block, S_pad, D), lambda g: (g, 0, 0),
                            **seq_spec_kwargs)

    out = pl.pallas_call(
        kernel,
        out_shape=jax.ShapeDtypeStruct((G, user_block, D), f32),
        grid_spec=pltpu.PrefetchScalarGridSpec(
            num_scalar_prefetch=0,
            grid=(G,),
            in_specs=[
                pl.BlockSpec((1, user_block, D), lambda g: (g, 0, 0)),  # users
                seq_spec(),                                             # items
                seq_spec(),                                             # time
                seq_spec(),                                             # w_filters
                pl.BlockSpec((D, C), lambda g: (0, 0)),                 # Wq K^T/sqrt(D)
                pl.BlockSpec((C, D), lambda g: (0, 0)),                 # V
            ],
            out_specs=pl.BlockSpec((1, user_block, D), lambda g: (g, 0, 0)),
        ),
        compiler_params=pltpu.CompilerParams(
            dimension_semantics=("parallel",),
            vmem_limit_bytes=vmem_budget),
        cost_estimate=cost,
    )(user_p, items_p, time_p, wfil_p, Wqk, V)

    return out.reshape(U_pad, D)[:U]                             # (U, D)


def filter_long_forward(user_embedding, item_embedding, cluster_emb,
                        item_seq_ids, time_embs, w_filters, Wq, Wk, Wv,
                        users, pos_items, neg_items, alpha1, alpha2, alpha3,
                        *, user_block=None, matmul_dtype=jnp.float32,
                        storage_dtype=jnp.float32, seq_buffers=2):
    """Mirrors Filter_long.forward: returns (u_g, pos_i_g, neg_i_g)."""
    # Per-user item-sequence gather.  At D=32 (128 B rows) per-row DMA gathers
    # inside the kernel would be too small, so this stays an XLA gather that
    # (under jit) fuses with the pad/cast in the wrapper.
    item_seq_embs = item_embedding[item_seq_ids]                 # (U, S, D)
    user_mix_embs = filter_long_user_mix(
        user_embedding, item_seq_embs, time_embs, w_filters,
        cluster_emb, Wq, Wk, Wv, alpha1, alpha2, alpha3,
        user_block=user_block, matmul_dtype=matmul_dtype,
        storage_dtype=storage_dtype, seq_buffers=seq_buffers)
    u_g = user_mix_embs[users, :]
    pos_i_g = item_embedding[pos_items, :]
    neg_i_g = item_embedding[neg_items, :]
    return u_g, pos_i_g, neg_i_g


def _reference_user_mix(user_embedding, item_seq_embs, time_embs, w_filters,
                        cluster_emb, Wq, Wk, Wv, a1, a2, a3):
    """Pure-JAX reference of filter_long_interest (items truncated to k per user)."""
    def one_user(u_emb, items, times, wfil):
        short = u_emb[None, :] + items + times
        Q = short @ Wq
        K = cluster_emb @ Wk
        V = cluster_emb @ Wv
        s = (Q @ K.T) / jnp.sqrt(jnp.float32(Q.shape[-1]))
        A = jax.nn.softmax(s, axis=-1)
        shorted = A @ V
        M = shorted.T @ wfil
        new_u = (u_emb[None, :] @ M)[0]
        return a3 * (a1 * u_emb + a2 * new_u)
    return jax.vmap(one_user)(user_embedding, item_seq_embs, time_embs, w_filters)


if __name__ == "__main__":
    # Accurate f32 matmuls everywhere (reference + kernel pin HIGHEST) so the
    # algebraically-reassociated kernel can be checked against the reference at
    # 1e-4; production runs would pass storage_dtype/matmul_dtype=bfloat16.
    jax.config.update("jax_default_matmul_precision", "highest")

    # Small synthetic shapes consistent with the module:
    #   k = 10 items kept per user, dimension = 32, 8 users, 20 items, 4 clusters
    U, N_ITEMS, S, D, C = 8, 20, 10, 32, 4
    B = 4  # batch of (user, pos, neg) triples

    key = jax.random.PRNGKey(0)
    ks = jax.random.split(key, 10)

    user_embedding = jax.random.normal(ks[0], (U, D), jnp.float32)
    item_embedding = jax.random.normal(ks[1], (N_ITEMS, D), jnp.float32)
    cluster_emb = jax.random.normal(ks[2], (C, D), jnp.float32)
    # per-user interaction sequences (ids) and their time embeddings
    item_seq_ids = jax.random.randint(ks[3], (U, S), 0, N_ITEMS)
    time_embs = 0.1 * jax.random.normal(ks[4], (U, S, D), jnp.float32)
    # w_filters: per user a (k, dim) filter, randn-initialized as in init_para
    w_filters = jax.random.normal(ks[5], (U, S, D), jnp.float32)
    # Wq/Wk/Wv: xavier_uniform_ on (dimension, dimension)
    xav = jnp.sqrt(6.0 / (D + D))
    Wq = jax.random.uniform(ks[6], (D, D), jnp.float32, -xav, xav)
    Wk = jax.random.uniform(ks[7], (D, D), jnp.float32, -xav, xav)
    Wv = jax.random.uniform(ks[8], (D, D), jnp.float32, -xav, xav)

    users = jnp.array([0, 3, 5, 7], dtype=jnp.int32)
    pos_items = jnp.array([1, 4, 9, 12], dtype=jnp.int32)
    neg_items = jnp.array([2, 6, 11, 15], dtype=jnp.int32)
    alpha1, alpha2, alpha3 = 0.7, 0.3, 1.0

    fwd = jax.jit(functools.partial(
        filter_long_forward, alpha1=alpha1, alpha2=alpha2, alpha3=alpha3))
    u_g, pos_g, neg_g = fwd(user_embedding, item_embedding, cluster_emb,
                            item_seq_ids, time_embs, w_filters, Wq, Wk, Wv,
                            users, pos_items, neg_items)
    jax.block_until_ready((u_g, pos_g, neg_g))

    # correctness check against a pure-JAX reference
    ref_mix = _reference_user_mix(
        user_embedding, item_embedding[item_seq_ids], time_embs, w_filters,
        cluster_emb, Wq, Wk, Wv, alpha1, alpha2, alpha3)
    assert jnp.allclose(u_g, ref_mix[users, :], rtol=1e-4, atol=1e-4)
    assert u_g.shape == (B, D) and pos_g.shape == (B, D) and neg_g.shape == (B, D)

    print("KERNEL_OK")
</pallas_src>

<mosaic_0001>
module attributes {stable_mosaic.version = 11 : i64} {
  func.func @_filter_long_kernel(%arg0: i32, %arg1: memref<1x8x32xf32, #tpu.memory_space<vmem>>, %arg2: memref<8x16x32xf32, #tpu.memory_space<vmem>>, %arg3: memref<8x16x32xf32, #tpu.memory_space<vmem>>, %arg4: memref<8x16x32xf32, #tpu.memory_space<vmem>>, %arg5: memref<32x4xf32, #tpu.memory_space<vmem>>, %arg6: memref<4x32xf32, #tpu.memory_space<vmem>>, %arg7: memref<1x8x32xf32, #tpu.memory_space<vmem>>) attributes {dimension_semantics = [#tpu.dimension_semantics<parallel>], iteration_bounds = array<i64: 1>, scalar_prefetch = 0 : i64, scratch_operands = 0 : i64, tpu.core_type = #tpu.core_type<tc>, window_params = [{transform_indices = @transform_0, window_bounds = array<i64: 1, 8, 32>}, {transform_indices = @transform_1, window_bounds = array<i64: 8, 16, 32>}, {transform_indices = @transform_2, window_bounds = array<i64: 8, 16, 32>}, {transform_indices = @transform_3, window_bounds = array<i64: 8, 16, 32>}, {pipeline_mode = #tpu.pipeline_mode<synchronous>, transform_indices = @transform_4, window_bounds = array<i64: 32, 4>}, {pipeline_mode = #tpu.pipeline_mode<synchronous>, transform_indices = @transform_5, window_bounds = array<i64: 4, 32>}, {transform_indices = @transform_6, window_bounds = array<i64: 1, 8, 32>}]} {
    %c0 = arith.constant 0 : index
    %c0_0 = arith.constant 0 : index
    %c0_1 = arith.constant 0 : index
    %0 = vector.load %arg1[%c0, %c0_0, %c0_1] : memref<1x8x32xf32, #tpu.memory_space<vmem>>, vector<1x8x32xf32>
    %1 = vector.shape_cast %0 : vector<1x8x32xf32> to vector<8x32xf32>
    %2 = vector.shape_cast %1 : vector<8x32xf32> to vector<8x1x32xf32>
    %3 = vector.shape_cast %2 : vector<8x1x32xf32> to vector<8x1x32xf32>
    %4 = vector.broadcast %3 : vector<8x1x32xf32> to vector<8x16x32xf32>
    %c0_2 = arith.constant 0 : index
    %c0_3 = arith.constant 0 : index
    %c0_4 = arith.constant 0 : index
    %5 = vector.load %arg2[%c0_2, %c0_3, %c0_4] : memref<8x16x32xf32, #tpu.memory_space<vmem>>, vector<8x16x32xf32>
    %6 = arith.addf %4, %5 : vector<8x16x32xf32>
    %c0_5 = arith.constant 0 : index
    %c0_6 = arith.constant 0 : index
    %c0_7 = arith.constant 0 : index
    %7 = vector.load %arg3[%c0_5, %c0_6, %c0_7] : memref<8x16x32xf32, #tpu.memory_space<vmem>>, vector<8x16x32xf32>
    %8 = arith.addf %6, %7 : vector<8x16x32xf32>
    %9 = vector.shape_cast %8 : vector<8x16x32xf32> to vector<128x32xf32>
    %c0_8 = arith.constant 0 : index
    %c0_9 = arith.constant 0 : index
    %10 = vector.load %arg5[%c0_8, %c0_9] : memref<32x4xf32, #tpu.memory_space<vmem>>, vector<32x4xf32>
    %cst = arith.constant dense<0.000000e+00> : vector<128x4xf32>
    %11 = tpu.matmul %9, %10, %cst {dimension_numbers = #tpu.dot_dimension_numbers<[1], [0], [0], [1], [0, 0, 1, 1], [], []>, precision = #tpu.contract_precision<fp32>} : vector<128x32xf32>, vector<32x4xf32>, vector<128x4xf32> -> vector<128x4xf32>
    %c0_10 = arith.constant 0 : index
    %c0_11 = arith.constant 0 : index
    %12 = vector.load %arg6[%c0_10, %c0_11] : memref<4x32xf32, #tpu.memory_space<vmem>>, vector<4x32xf32>
    %13 = vector.extract_strided_slice %11 {offsets = [0, 0], sizes = [128, 1], strides = [1, 1]} : vector<128x4xf32> to vector<128x1xf32>
    %14 = vector.extract_strided_slice %11 {offsets = [0, 1], sizes = [128, 1], strides = [1, 1]} : vector<128x4xf32> to vector<128x1xf32>
    %15 = vector.extract_strided_slice %11 {offsets = [0, 2], sizes = [128, 1], strides = [1, 1]} : vector<128x4xf32> to vector<128x1xf32>
    %16 = vector.extract_strided_slice %11 {offsets = [0, 3], sizes = [128, 1], strides = [1, 1]} : vector<128x4xf32> to vector<128x1xf32>
    %17 = arith.maximumf %13, %14 : vector<128x1xf32>
    %18 = arith.maximumf %17, %15 : vector<128x1xf32>
    %19 = arith.maximumf %18, %16 : vector<128x1xf32>
    %20 = arith.subf %13, %19 : vector<128x1xf32>
    %21 = math.exp %20 : vector<128x1xf32>
    %22 = arith.subf %14, %19 : vector<128x1xf32>
    %23 = math.exp %22 : vector<128x1xf32>
    %24 = arith.subf %15, %19 : vector<128x1xf32>
    %25 = math.exp %24 : vector<128x1xf32>
    %26 = arith.subf %16, %19 : vector<128x1xf32>
    %27 = math.exp %26 : vector<128x1xf32>
    %28 = arith.addf %21, %23 : vector<128x1xf32>
    %29 = arith.addf %28, %25 : vector<128x1xf32>
    %30 = arith.addf %29, %27 : vector<128x1xf32>
    %31 = tpu.reciprocal %30 : vector<128x1xf32> -> vector<128x1xf32>
    %32 = arith.mulf %21, %31 : vector<128x1xf32>
    %33 = vector.extract_strided_slice %12 {offsets = [0, 0], sizes = [1, 32], strides = [1, 1]} : vector<4x32xf32> to vector<1x32xf32>
    %34 = vector.broadcast %32 : vector<128x1xf32> to vector<128x32xf32>
    %35 = vector.broadcast %33 : vector<1x32xf32> to vector<128x32xf32>
    %36 = arith.mulf %34, %35 : vector<128x32xf32>
    %37 = arith.mulf %23, %31 : vector<128x1xf32>
    %38 = vector.extract_strided_slice %12 {offsets = [1, 0], sizes = [1, 32], strides = [1, 1]} : vector<4x32xf32> to vector<1x32xf32>
    %39 = vector.broadcast %37 : vector<128x1xf32> to vector<128x32xf32>
    %40 = vector.broadcast %38 : vector<1x32xf32> to vector<128x32xf32>
    %41 = arith.mulf %39, %40 : vector<128x32xf32>
    %42 = arith.addf %36, %41 : vector<128x32xf32>
    %43 = arith.mulf %25, %31 : vector<128x1xf32>
    %44 = vector.extract_strided_slice %12 {offsets = [2, 0], sizes = [1, 32], strides = [1, 1]} : vector<4x32xf32> to vector<1x32xf32>
    %45 = vector.broadcast %43 : vector<128x1xf32> to vector<128x32xf32>
    %46 = vector.broadcast %44 : vector<1x32xf32> to vector<128x32xf32>
    %47 = arith.mulf %45, %46 : vector<128x32xf32>
    %48 = arith.addf %42, %47 : vector<128x32xf32>
    %49 = arith.mulf %27, %31 : vector<128x1xf32>
    %50 = vector.extract_strided_slice %12 {offsets = [3, 0], sizes = [1, 32], strides = [1, 1]} : vector<4x32xf32> to vector<1x32xf32>
    %51 = vector.broadcast %49 : vector<128x1xf32> to vector<128x32xf32>
    %52 = vector.broadcast %50 : vector<1x32xf32> to vector<128x32xf32>
    %53 = arith.mulf %51, %52 : vector<128x32xf32>
    %54 = arith.addf %48, %53 : vector<128x32xf32>
    %55 = vector.shape_cast %54 : vector<128x32xf32> to vector<8x16x32xf32>
    %56 = arith.mulf %4, %55 : vector<8x16x32xf32>
    %cst_12 = arith.constant dense<0.000000e+00> : vector<8x16xf32>
    %57 = vector.multi_reduction <add>, %56, %cst_12 [2] : vector<8x16x32xf32> to vector<8x16xf32>
    %58 = vector.shape_cast %57 : vector<8x16xf32> to vector<8x16x1xf32>
    %c0_13 = arith.constant 0 : index
    %c0_14 = arith.constant 0 : index
    %c0_15 = arith.constant 0 : index
    %59 = vector.load %arg4[%c0_13, %c0_14, %c0_15] : memref<8x16x32xf32, #tpu.memory_space<vmem>>, vector<8x16x32xf32>
    %60 = vector.broadcast %58 : vector<8x16x1xf32> to vector<8x16x32xf32>
    %61 = arith.mulf %60, %59 : vector<8x16x32xf32>
    %cst_16 = arith.constant dense<0.000000e+00> : vector<8x32xf32>
    %62 = vector.multi_reduction <add>, %61, %cst_16 [1] : vector<8x16x32xf32> to vector<8x32xf32>
    %cst_17 = arith.constant 0.699999988 : f32
    %63 = vector.broadcast %cst_17 : f32 to vector<8x32xf32>
    %64 = arith.mulf %63, %1 : vector<8x32xf32>
    %cst_18 = arith.constant 3.000000e-01 : f32
    %65 = vector.broadcast %cst_18 : f32 to vector<8x32xf32>
    %66 = arith.mulf %65, %62 : vector<8x32xf32>
    %67 = arith.addf %64, %66 : vector<8x32xf32>
    %cst_19 = arith.constant 1.000000e+00 : f32
    %68 = vector.broadcast %cst_19 : f32 to vector<8x32xf32>
    %69 = arith.mulf %68, %67 : vector<8x32xf32>
    %c0_20 = arith.constant 0 : index
    %c0_21 = arith.constant 0 : index
    %c0_22 = arith.constant 0 : index
    %70 = vector.load %arg7[%c0_20, %c0_21, %c0_22] : memref<1x8x32xf32, #tpu.memory_space<vmem>>, vector<1x8x32xf32>
    %71 = vector.shape_cast %70 : vector<1x8x32xf32> to vector<8x32xf32>
    %72 = vector.shape_cast %69 : vector<8x32xf32> to vector<1x8x32xf32>
    tpu.vector_store %arg7[%c0_20, %c0_21, %c0_22], %72 {strides = array<i32>} : memref<1x8x32xf32, #tpu.memory_space<vmem>>, vector<1x8x32xf32>,
    return
  }
  func.func @transform_0(%arg0: i32) -> (i32, i32, i32) {
    %c0_i32 = arith.constant 0 : i32
    %c0_i32_0 = arith.constant 0 : i32
    %c0_i32_1 = arith.constant 0 : i32
    return %arg0, %c0_i32, %c0_i32_0 : i32, i32, i32
  }
  func.func @transform_1(%arg0: i32) -> (i32, i32, i32) {
    %c0_i32 = arith.constant 0 : i32
    %c0_i32_0 = arith.constant 0 : i32
    %c0_i32_1 = arith.constant 0 : i32
    return %arg0, %c0_i32, %c0_i32_0 : i32, i32, i32
  }
  func.func @transform_2(%arg0: i32) -> (i32, i32, i32) {
    %c0_i32 = arith.constant 0 : i32
    %c0_i32_0 = arith.constant 0 : i32
    %c0_i32_1 = arith.constant 0 : i32
    return %arg0, %c0_i32, %c0_i32_0 : i32, i32, i32
  }
  func.func @transform_3(%arg0: i32) -> (i32, i32, i32) {
    %c0_i32 = arith.constant 0 : i32
    %c0_i32_0 = arith.constant 0 : i32
    %c0_i32_1 = arith.constant 0 : i32
    return %arg0, %c0_i32, %c0_i32_0 : i32, i32, i32
  }
  func.func @transform_4(%arg0: i32) -> (i32, i32) {
    %c0_i32 = arith.constant 0 : i32
    %c0_i32_0 = arith.constant 0 : i32
    %c0_i32_1 = arith.constant 0 : i32
    return %c0_i32, %c0_i32_0 : i32, i32
  }
  func.func @transform_5(%arg0: i32) -> (i32, i32) {
    %c0_i32 = arith.constant 0 : i32
    %c0_i32_0 = arith.constant 0 : i32
    %c0_i32_1 = arith.constant 0 : i32
    return %c0_i32, %c0_i32_0 : i32, i32
  }
  func.func @transform_6(%arg0: i32) -> (i32, i32, i32) {
    %c0_i32 = arith.constant 0 : i32
    %c0_i32_0 = arith.constant 0 : i32
    %c0_i32_1 = arith.constant 0 : i32
    return %arg0, %c0_i32, %c0_i32_0 : i32, i32, i32
  }
}

</mosaic_0001>

<bundles_post_ra>
// kernel: filter_long_forward.1
= control target key start
LH: loop header
LB: loop body
LE: loop exit
PB: predicated region body
PF: predicated region fallthrough
CT: control target
= control target key end

     0   :  { %v29_v0 = vlaneseq  ;;  %v3587_v4 = vmov 1966171168   ;;  %vm182_vm0 = vcmask 261120   ;;  %s3589_s19 = smov 127   ;;  %s3590_s20 = smov 125   ;;  %vm3035_vm1 = vcmask 1041409   ;;  %s5150_s4 = inlined_call_operand.vmem [shape: f32[32,4], index: 4, kind: input, shape index: {}]   ;;  %s5151_s0 = inlined_call_operand.vmem [shape: f32[1,8,32], index: 0, kind: input, shape index: {}]   ;;  %s5152_s1 = inlined_call_operand.vmem [shape: f32[8,16,32], index: 1, kind: input, shape index: {}]   ;;  %s5153_s2 = inlined_call_operand.vmem [shape: f32[8,16,32], index: 2, kind: input, shape index: {}]   ;;  %s5154_s5 = inlined_call_operand.vmem [shape: f32[4,32], index: 5, kind: input, shape index: {}]   ;;  %s5155_s3 = inlined_call_operand.vmem [shape: f32[8,16,32], index: 3, kind: input, shape index: {}]   ;;  %s5156_s6 = inlined_call_operand.vmem [shape: f32[1,8,32], index: 6, kind: output, shape index: {}]  }
   0x1   :  { %v181_v1 = vld [vmem:[%s5150_s4 + $0x18] sm:$0xff]  ;;  %v180_v2 = vld [vmem:[%s5150_s4 + $0x10] sm:$0xff]  ;;  %v179_v3 = vld [vmem:[%s5150_s4 + $0x8] sm:$0xff]  ;;  %v27_v5 = vunpack.c.l.s4 %v3587_v4  ;;  %s3591_s21 = smov 1   ;;  %s3592_s22 = smov 2   ;;  %vm3037_vm2 = vcmask 1042434  }
   0x2   :  { %v3642_v6 = vand.u32 4294901760, %v181_v1  ;;  %v3644_v7 = vand.u32 4294901760, %v180_v2  ;;  %v3646_v8 = vand.u32 4294901760, %v179_v3  ;;  %v178_v9 = vld [vmem:[%s5150_s4] sm:$0xff]  ;;  %v3651_v10 = vshrl.u32 %v29_v0, 7  ;;  %v115_v36 = vld [vmem:[%s5152_s1 + $0x8] sm:$0xff] }
   0x3   :  { %v3653_v11 = vand.u32 4294901760, %v178_v9  ;;  %v28_v12 = vunpack.c.0.s8 %v27_v5  ;;  %v23_v16 = vld [vmem:[%s5151_s0] sm:$0xff]  ;;  %v147_v43 = vld [vmem:[%s5153_s2 + $0x8] sm:$0xff]  ;;  %v116_v44 = vld [vmem:[%s5152_s1 + $0x10] sm:$0xff]  ;;  %s3593_s23 = smov 3   ;;  %vm3039_vm3 = vcmask 1043459  }
   0x4   :  { %5217 = vst [vmem:[#allocation2_spill] sm:$0xff] %v3651_v10  ;;  %3176 = vmatprep.subr.mxu0 %v3642_v6  ;;  %v3657_v13 = vsub.f32 %v181_v1, %v3642_v6  ;;  %v3660_v14 = vsub.f32 %v180_v2, %v3644_v7  ;;  %v3663_v15 = vsub.f32 %v179_v3, %v3646_v8  ;;  %v3688_v25 = vsub.s32 0, %v3651_v10  ;;  %v114_v35 = vld [vmem:[%s5152_s1] sm:$0xff]  ;;  %v117_v45 = vld [vmem:[%s5152_s1 + $0x18] sm:$0xff]  ;;  %v119_v53 = vld [vmem:[%s5152_s1 + $0x28] sm:$0xff] }
   0x5   :  { %3177 = vmatpush3.msra.mxu0 %v3642_v6  ;;  %v3670_v17 = vsub.f32 %v178_v9, %v3653_v11  ;;  %v25_v18 = vcombine.high %v23_v16, %v23_v16  ;;  %v31_v19 = vsub.s32 %v28_v12, %v3651_v10  ;;  %v146_v39 = vld [vmem:[%s5153_s2] sm:$0xff]  ;;  %v148_v55 = vld [vmem:[%s5153_s2 + $0x10] sm:$0xff]  ;;  %v149_v56 = vld [vmem:[%s5153_s2 + $0x18] sm:$0xff]  ;;  %vm3041_vm4 = vcmask 1044484  }
   0x6   :  { %v3674_v20 = vand.u32 4294901760, %v3657_v13  ;;  %3178 = vmatprep.subr.mxu0 %v3644_v7  ;;  %v3678_v21 = vand.u32 4294901760, %v3660_v14  ;;  %v3681_v22 = vand.u32 4294901760, %v3663_v15  ;;  %5218 = vst [vmem:[#allocation3_spill] sm:$0xff] %v3688_v25  ;;  %v118_v52 = vld [vmem:[%s5152_s1 + $0x20] sm:$0xff]  ;;  %v151_v2 = vld [vmem:[%s5153_s2 + $0x28] sm:$0xff] }
   0x7   :  { %3179 = vmatpush3.msra.mxu0 %v3644_v7  ;;  %v3685_v23 = vand.u32 4294901760, %v3670_v17  ;;  %v32_v24 = vrot.slane %v23_v16, %v31_v19  ;;  %v39_v32 = vrot.slane %v25_v18, %v31_v19  ;;  %v122_v54 = vld [vmem:[%s5152_s1 + $0x40] sm:$0xff]  ;;  %v120_v9 = vld [vmem:[%s5152_s1 + $0x30] sm:$0xff]  ;;  %v121_v12 = vld [vmem:[%s5152_s1 + $0x38] sm:$0xff]  ;;  %vm3043_vm5 = vcmask 1045509  }
   0x8   :  { %v488_v26 = vsub.f32 %v3657_v13, %v3674_v20  ;;  %v495_v27 = vsub.f32 %v3660_v14, %v3678_v21  ;;  %3180 = vmatprep.subr.mxu0 %v3646_v8  ;;  %v502_v28 = vsub.f32 %v3663_v15, %v3681_v22  ;;  %v150_v1 = vld [vmem:[%s5153_s2 + $0x20] sm:$0xff]  ;;  %vm3045_vm6 = vcmask 1046534  }
   0x9   :  { %3181 = vmatpush3.msra.mxu0 %v3646_v8  ;;  %v509_v29 = vsub.f32 %v3670_v17, %v3685_v23  ;;  %v40_v30 = vcombine.high %v32_v24, %v32_v24  ;;  %v48_v31 = vrot.slane %v32_v24, %v31_v19  ;;  %v3724_v46 = vrot.slane %v39_v32, %v31_v19 }
   0xa   :  { %v489_v33 = vand.u32 4294901760, %v488_v26  ;;  %v496_v34 = vand.u32 4294901760, %v495_v27  ;;  %3182 = vmatprep.subr.mxu0 %v3653_v11  ;;  %v503_v41 = vand.u32 4294901760, %v502_v28  ;;  %v41_v47 = vcombine.high %v39_v32, %v39_v32  ;;  %v153_v32 = vld [vmem:[%s5153_s2 + $0x38] sm:$0xff] }
   0xb   :  { %3183 = vmatpush3.msra.mxu0 %v3653_v11  ;;  %v70_v37 = vcombine.high %v48_v31, %v48_v31  ;;  %v3709_v38 = vrot.slane %v48_v31, %v3688_v25  ;;  %v62_v40 = vrot.slane %v40_v30, %v31_v19  ;;  %v510_v42 = vand.u32 4294901760, %v509_v29  ;;  %v152_v31 = vld [vmem:[%s5153_s2 + $0x30] sm:$0xff] }
   0xc   :  { %3208 = vmatprep.subr.mxu1 %v489_v33  ;;  %3240 = vmatprep.subr.mxu0 %v3657_v13  ;;  %v3751_v58 = vrot.slane %v3724_v46, %v3688_v25  ;;  %v3753_v59 = vrot.slane %v41_v47, %v31_v19  ;;  %v71_v60 = vcombine.high %v3724_v46, %v3724_v46  ;;  %v156_v46 = vld [vmem:[%s5153_s2 + $0x50] sm:$0xff]  ;;  %vm3047_vm7 = vcmask 1047559  }
   0xd   :  { %5219 = vst [vmem:[#allocation4_spill] sm:$0xff] %v3709_v38  ;;  %3209 = vmatpush3.msra.mxu1 %v489_v33  ;;  %v130_v48 = vadd.f32 %v114_v35, %v3709_v38  ;;  %v131_v49 = vadd.f32 %v115_v36, %v3709_v38  ;;  %v3729_v50 = vrot.slane %v62_v40, %v3688_v25 }
   0xe   :  { %v3732_v51 = vrot.slane %v70_v37, %v3688_v25  ;;  %3210 = vmatprep.subr.mxu1 %v496_v34  ;;  %v72_v57 = vcombine.high %v62_v40, %v62_v40  ;;  %5222 = vst [vmem:[#allocation7_spill] sm:$0xff] %v3751_v58  ;;  %v3777_v16 = vadd.f32 %v122_v54, %v3751_v58 }
   0xf   :  { %5220 = vst [vmem:[#allocation5_spill] sm:$0xff] %v3729_v50  ;;  %3211 = vmatpush3.msra.mxu1 %v496_v34  ;;  %v162_v61 = vadd.f32 %v146_v39, %v130_v48  ;;  %v163_v62 = vadd.f32 %v147_v43, %v131_v49  ;;  %v132_v63 = vadd.f32 %v116_v44, %v3729_v50 }
  0x10   :  { %5221 = vst [vmem:[#allocation6_spill] sm:$0xff] %v3732_v51  ;;  %v133_v0 = vadd.f32 %v117_v45, %v3729_v50  ;;  %3212 = vmatprep.subr.mxu1 %v503_v41  ;;  %v134_v3 = vadd.f32 %v118_v52, %v3732_v51  ;;  %v135_v4 = vadd.f32 %v119_v53, %v3732_v51 }
  0x11   :  { %v3768_v5 = vrot.slane %v72_v57, %v3688_v25  ;;  %3213 = vmatpush3.msra.mxu1 %v503_v41  ;;  %v184_v18 = vsel %vm182_vm0, %v162_v61, 0  ;;  %v187_v19 = vsel %vm182_vm0, %v163_v62, 0  ;;  %v164_v24 = vadd.f32 %v148_v55, %v132_v63 }
  0x12   :  { %v165_v26 = vadd.f32 %v149_v56, %v133_v0  ;;  %3214 = vmatprep.subr.mxu1 %v510_v42  ;;  %v3781_v27 = vand.u32 4294901760, %v184_v18  ;;  %v3783_v28 = vand.u32 4294901760, %v187_v19  ;;  %v166_v29 = vadd.f32 %v150_v1, %v134_v3 }
  0x13   :  { %5223 = vst [vmem:[#allocation8_spill] sm:$0xff] %v3768_v5  ;;  %v167_v30 = vadd.f32 %v151_v2, %v135_v4  ;;  %3215 = vmatpush3.msra.mxu1 %v510_v42  ;;  %v190_v33 = vsel %vm182_vm0, %v164_v24, 0  ;;  %v136_v35 = vadd.f32 %v120_v9, %v3768_v5  ;;  %v137_v36 = vadd.f32 %v121_v12, %v3768_v5  ;;  %v154_v4 = vld [vmem:[%s5153_s2 + $0x40] sm:$0xff]  ;;  %v123_v9 = vld [vmem:[%s5152_s1 + $0x48] sm:$0xff] }
  0x14   :  { %v193_v34 = vsel %vm182_vm0, %v165_v26, 0  ;;  %v3796_v37 = vsub.f32 %v184_v18, %v3781_v27  ;;  %3216 = vmatprep.mubr.f32.mxu1 %v3781_v27  ;;  %v3800_v39 = vsub.f32 %v187_v19, %v3783_v28  ;;  %3272 = vmatprep.subr.mxu1 %v3642_v6  ;;  %v3803_v40 = vand.u32 4294901760, %v190_v33 }
  0x15   :  { %v3805_v41 = vand.u32 4294901760, %v193_v34  ;;  %3217 = vmatmul.mubr.f32.vlgmr.msra.gmra.mxu1 %v3783_v28  ;;  %v196_v42 = vsel %vm182_vm0, %v166_v29, 0  ;;  %v199_v43 = vsel %vm182_vm0, %v167_v30, 0  ;;  %v168_v44 = vadd.f32 %v152_v31, %v136_v35 }
  0x16   :  { %v169_v45 = vadd.f32 %v153_v32, %v137_v36  ;;  %v302_v47 = vand.u32 4294901760, %v3796_v37  ;;  %v5167_v48 = vand.u32 4294901760, %v3800_v39  ;;  %3273 = vmatpush3.msra.mxu1 %v3642_v6  ;;  %v3814_v49 = vsub.f32 %v190_v33, %v3803_v40  ;;  %3219 = vmatprep.mubr.f32.mxu1 %v3803_v40  ;;  %v155_v32 = vld [vmem:[%s5153_s2 + $0x48] sm:$0xff] }
  0x17   :  { %v3818_v52 = vsub.f32 %v193_v34, %v3805_v41  ;;  %v3820_v53 = vand.u32 4294901760, %v196_v42  ;;  %v3822_v54 = vand.u32 4294901760, %v199_v43  ;;  %3274 = vmatprep.subr.mxu1 %v3644_v7  ;;  %v202_v55 = vsel %vm182_vm0, %v168_v44, 0 }
  0x18   :  { %v205_v56 = vsel %vm182_vm0, %v169_v45, 0  ;;  %v303_v57 = vsub.f32 %v3796_v37, %v302_v47  ;;  %v313_v61 = vsub.f32 %v3800_v39, %v5167_v48  ;;  %v5164_v62 = vand.u32 4294901760, %v3814_v49  ;;  %3275 = vmatpush3.msra.mxu1 %v3644_v7 }
  0x19   :  { %v5163_v63 = vand.u32 4294901760, %v3818_v52  ;;  %3220 = vmatmul.mubr.f32.gmra.mxu1 %v3805_v41  ;;  %v3838_v0 = vsub.f32 %v196_v42, %v3820_v53  ;;  %v3841_v1 = vsub.f32 %v199_v43, %v3822_v54  ;;  %v3843_v2 = vand.u32 4294901760, %v202_v55  ;;  %3276 = vmatprep.subr.mxu1 %v3646_v8 }
  0x1a   :  { %v3845_v3 = vand.u32 4294901760, %v205_v56  ;;  %v304_v12 = vand.u32 4294901760, %v303_v57  ;;  %v314_v18 = vand.u32 4294901760, %v313_v61  ;;  %v323_v19 = vsub.f32 %v3814_v49, %v5164_v62  ;;  %3222 = vmatprep.mubr.f32.mxu1 %v3820_v53  ;;  %3277 = vmatpush3.msra.mxu1 %v3646_v8 }
  0x1b   :  { %v333_v24 = vsub.f32 %v3818_v52, %v5163_v63  ;;  %v5162_v26 = vand.u32 4294901760, %v3838_v0  ;;  %v5159_v29 = vand.u32 4294901760, %v3841_v1  ;;  %v3865_v30 = vsub.f32 %v202_v55, %v3843_v2  ;;  %3278 = vmatprep.subr.mxu1 %v3653_v11  ;;  %v125_v55 = vld [vmem:[%s5152_s1 + $0x58] sm:$0xff] }
  0x1c   :  { %v3868_v31 = vsub.f32 %v205_v56, %v3845_v3  ;;  %3184 = vmatprep.mubr.f32.mxu0 %v304_v12  ;;  %v324_v33 = vand.u32 4294901760, %v323_v19  ;;  %v170_v35 = vadd.f32 %v154_v4, %v3777_v16  ;;  %v139_v36 = vadd.f32 %v123_v9, %v3751_v58  ;;  %3279 = vmatpush3.msra.mxu1 %v3653_v11  ;;  %v124_v16 = vld [vmem:[%s5152_s1 + $0x50] sm:$0xff]  ;;  %v126_v9 = vld [vmem:[%s5152_s1 + $0x60] sm:$0xff] }
  0x1d   :  { %v334_v34 = vand.u32 4294901760, %v333_v24  ;;  %3185 = vmatmul.mubr.f32.vlgmr.msra.gmra.mxu0 %v314_v18  ;;  %v343_v42 = vsub.f32 %v3838_v0, %v5162_v26  ;;  %v353_v43 = vsub.f32 %v3841_v1, %v5159_v29  ;;  %3223 = vmatmul.mubr.f32.gmra.mxu1 %v3822_v54  ;;  %v5158_v44 = vand.u32 4294901760, %v3865_v30 }
  0x1e   :  { %v5157_v45 = vand.u32 4294901760, %v3868_v31  ;;  %3241 = vmatpush3.msra.mxu0 %v3657_v13  ;;  %3187 = vmatprep.mubr.f32.mxu0 %v324_v33  ;;  %v208_v56 = vsel %vm182_vm0, %v170_v35, 0  ;;  %v171_v57 = vadd.f32 %v155_v32, %v139_v36  ;;  %v3896_v61 = vrot.slane %v3753_v59, %v3688_v25  ;;  %v158_v35 = vld [vmem:[%s5153_s2 + $0x60] sm:$0xff]  ;;  %v127_v36 = vld [vmem:[%s5152_s1 + $0x68] sm:$0xff] }
  0x1f   :  { %v3902_v4 = vrot.slane %v71_v60, %v3688_v25  ;;  %v344_v12 = vand.u32 4294901760, %v343_v42  ;;  %3242 = vmatprep.subr.mxu0 %v3660_v14  ;;  %v363_v13 = vsub.f32 %v3865_v30, %v5158_v44  ;;  %3225 = vmatprep.mubr.f32.mxu1 %v3843_v2  ;;  %v157_v60 = vld [vmem:[%s5153_s2 + $0x58] sm:$0xff]  ;;  %v3922_v19 = vand.u32 4294901760, %v208_v56 }
  0x20   :  { %5224 = vst [vmem:[#allocation9_spill] sm:$0xff] %v3896_v61  ;;  %v373_v18 = vsub.f32 %v3868_v31, %v5157_v45  ;;  %3243 = vmatpush3.msra.mxu0 %v3660_v14  ;;  %v211_v24 = vsel %vm182_vm0, %v171_v57, 0  ;;  %v140_v32 = vadd.f32 %v124_v16, %v3896_v61  ;;  %v141_v33 = vadd.f32 %v125_v55, %v3896_v61 }
  0x21   :  { %5225 = vst [vmem:[#allocation10_spill] sm:$0xff] %v3902_v4  ;;  %3336 = vmatprep.subr.mxu1 %v3642_v6  ;;  %3188 = vmatmul.mubr.f32.gmra.mxu0 %v334_v34  ;;  %v354_v14 = vand.u32 4294901760, %v353_v43  ;;  %v3935_v42 = vand.u32 4294901760, %v211_v24  ;;  %v142_v16 = vadd.f32 %v126_v9, %v3902_v4  ;;  %v364_v55 = vand.u32 4294901760, %v363_v13  ;;  %v159_v9 = vld [vmem:[%s5153_s2 + $0x68] sm:$0xff] }
  0x22   :  { %3226 = vmatmul.mubr.f32.gmra.mxu1 %v3845_v3  ;;  %3190 = vmatprep.mubr.f32.mxu0 %v344_v12  ;;  %v3939_v57 = vsub.f32 %v208_v56, %v3922_v19  ;;  %v172_v45 = vadd.f32 %v156_v46, %v140_v32  ;;  %v173_v44 = vadd.f32 %v157_v60, %v141_v33  ;;  %v374_v12 = vand.u32 4294901760, %v373_v18  ;;  %v128_v18 = vld [vmem:[%s5152_s1 + $0x70] sm:$0xff] }
  0x23   :  { %3228 = vmatprep.mubr.f32.mxu1 %v3922_v19  ;;  %3244 = vmatprep.subr.mxu0 %v3663_v15  ;;  %v3944_v34 = vsub.f32 %v211_v24, %v3935_v42  ;;  %v174_v43 = vadd.f32 %v158_v35, %v142_v16  ;;  %v143_v29 = vadd.f32 %v127_v36, %v3902_v4 }
  0x24   :  { %v73_v56 = vcombine.high %v3753_v59, %v3753_v59  ;;  %v5161_v13 = vand.u32 4294901760, %v3939_v57  ;;  %3245 = vmatpush3.msra.mxu0 %v3663_v15  ;;  %v214_v46 = vsel %vm182_vm0, %v172_v45, 0  ;;  %v217_v60 = vsel %vm182_vm0, %v173_v44, 0 }
  0x25   :  { %3191 = vmatmul.mubr.f32.gmra.mxu0 %v354_v14  ;;  %v5160_v24 = vand.u32 4294901760, %v3944_v34  ;;  %v3958_v32 = vand.u32 4294901760, %v214_v46  ;;  %v3960_v33 = vand.u32 4294901760, %v217_v60  ;;  %v220_v59 = vsel %vm182_vm0, %v174_v43, 0  ;;  %3246 = vmatprep.subr.mxu0 %v3670_v17 }
  0x26   :  { %3229 = vmatmul.mubr.f32.gmra.mxu1 %v3935_v42  ;;  %3193 = vmatprep.mubr.f32.mxu0 %v364_v55  ;;  %v383_v15 = vsub.f32 %v3939_v57, %v5161_v13  ;;  %v3969_v44 = vand.u32 4294901760, %v220_v59  ;;  %v175_v45 = vadd.f32 %v159_v9, %v143_v29  ;;  %v3973_v35 = vrot.slane %v73_v56, %v3688_v25  ;;  %v160_v29 = vld [vmem:[%s5153_s2 + $0x70] sm:$0xff]  ;;  %v129_v55 = vld [vmem:[%s5152_s1 + $0x78] sm:$0xff] }
  0x27   :  { %v393_v36 = vsub.f32 %v3944_v34, %v5160_v24  ;;  %v3979_v14 = vsub.f32 %v214_v46, %v3958_v32  ;;  %3231 = vmatprep.mubr.f32.mxu1 %v3958_v32  ;;  %v3983_v16 = vsub.f32 %v217_v60, %v3960_v33  ;;  %3247 = vmatpush3.msra.mxu0 %v3670_v17 }
  0x28   :  { %5226 = vst [vmem:[#allocation11_spill] sm:$0xff] %v3973_v35  ;;  %v384_v43 = vand.u32 4294901760, %v383_v15  ;;  %v3993_v9 = vsub.f32 %v220_v59, %v3969_v44  ;;  %v223_v56 = vsel %vm182_vm0, %v175_v45, 0  ;;  %v144_v46 = vadd.f32 %v128_v18, %v3973_v35  ;;  %3304 = vmatprep.subr.mxu0 %v3674_v20  ;;  %v161_v59 = vld [vmem:[%s5153_s2 + $0x78] sm:$0xff]  ;;  %s3588_s2 = smov 126  }
  0x29   :  { %3194 = vmatmul.mubr.f32.gmra.mxu0 %v374_v12  ;;  %v394_v17 = vand.u32 4294901760, %v393_v36  ;;  %v5165_v60 = vand.u32 4294901760, %v3979_v14  ;;  %v5166_v24 = vand.u32 4294901760, %v3983_v16  ;;  %v4001_v13 = vand.u32 4294901760, %v223_v56 }
  0x2a   :  { %3232 = vmatmul.mubr.f32.gmra.mxu1 %v3960_v33  ;;  %3196 = vmatprep.mubr.f32.mxu0 %v384_v43  ;;  %v5168_v15 = vand.u32 4294901760, %v3993_v9  ;;  %v176_v18 = vadd.f32 %v160_v29, %v144_v46  ;;  %v145_v12 = vadd.f32 %v129_v55, %v3973_v35 }
  0x2b   :  { %3234 = vmatprep.mubr.f32.mxu1 %v3969_v44  ;;  %v403_v45 = vsub.f32 %v3979_v14, %v5165_v60  ;;  %v413_v36 = vsub.f32 %v3983_v16, %v5166_v24  ;;  %v4016_v26 = vsub.f32 %v223_v56, %v4001_v13 }
  0x2c   :  { %v423_v43 = vsub.f32 %v3993_v9, %v5168_v15  ;;  %v226_v63 = vsel %vm182_vm0, %v176_v18, 0  ;;  %v177_v29 = vadd.f32 %v161_v59, %v145_v12 }
  0x2d   :  { %3197 = vmatmul.mubr.f32.gmra.mxu0 %v394_v17  ;;  %v404_v55 = vand.u32 4294901760, %v403_v45  ;;  %v414_v46 = vand.u32 4294901760, %v413_v36  ;;  %v432_v62 = vand.u32 4294901760, %v4016_v26  ;;  %v4024_v60 = vand.u32 4294901760, %v226_v63 }
  0x2e   :  { %3235 = vmatmul.mubr.f32.gmra.mxu1 %v4001_v13  ;;  %v424_v24 = vand.u32 4294901760, %v423_v43  ;;  %v229_v56 = vsel %vm182_vm0, %v177_v29, 0  ;;  %v5227_v29 = vand.u32 4294901760, %v3800_v39 }
  0x2f   :  { %3199 = vmatprep.mubr.f32.mxu0 %v404_v55  ;;  %v433_v48 = vsub.f32 %v4016_v26, %v432_v62  ;;  %v441_v15 = vsub.f32 %v226_v63, %v4024_v60  ;;  %3237 = vmatprep.mubr.f32.mxu1 %v4024_v60  ;;  %v4030_v59 = vand.u32 4294901760, %v229_v56 }
  0x31   :  { %3200 = vmatmul.mubr.f32.gmra.mxu0 %v414_v46  ;;  %v434_v17 = vand.u32 4294901760, %v433_v48  ;;  %v442_v18 = vand.u32 4294901760, %v441_v15  ;;  %v451_v12 = vsub.f32 %v229_v56, %v4030_v59  ;;  %v5228_v48 = vand.u32 4294901760, %v3814_v49 }
  0x32   :  { %3238 = vmatmul.mubr.f32.gmra.mxu1 %v4030_v59  ;;  %3202 = vmatprep.mubr.f32.mxu0 %v424_v24  ;;  %v5230_v24 = vand.u32 4294901760, %v3838_v0 }
  0x33   :  { %3280 = vmatprep.mubr.f32.mxu1 %v302_v47  ;;  %v443_v45 = vsub.f32 %v441_v15, %v442_v18  ;;  %v452_v36 = vand.u32 4294901760, %v451_v12  ;;  %v5229_v47 = vand.u32 4294901760, %v3818_v52 }
  0x35   :  { %3203 = vmatmul.mubr.f32.gmra.mxu0 %v434_v17  ;;  %v444_v43 = vand.u32 4294901760, %v443_v45  ;;  %v453_v63 = vsub.f32 %v451_v12, %v452_v36 }
  0x36   :  { %3281 = vmatmul.mubr.f32.vlgmr.msra.gmra.mxu1 %v5227_v29 }
  0x37   :  { %3337 = vmatpush3.msra.mxu1 %v3642_v6  ;;  %3283 = vmatprep.mubr.f32.mxu1 %v5228_v48  ;;  %v454_v55 = vand.u32 4294901760, %v453_v63  ;;  %v5231_v6 = vand.u32 4294901760, %v3841_v1 }
  0x38   :  { %3205 = vmatprep.mubr.f32.mxu0 %v444_v43  ;;  %3338 = vmatprep.subr.mxu1 %v3644_v7 }
  0x39   :  { %3339 = vmatpush3.msra.mxu1 %v3644_v7  ;;  %3206 = vmatmul.mubr.f32.gmra.mxu0 %v454_v55  ;;  %v5232_v7 = vand.u32 4294901760, %v3865_v30 }
  0x3a   :  { %3284 = vmatmul.mubr.f32.gmra.mxu1 %v5229_v47  ;;  %3248 = vmatprep.mubr.f32.mxu0 %v3796_v37  ;;  %v5236_v37 = vand.u32 4294901760, %v3979_v14 }
  0x3b   :  { %3286 = vmatprep.mubr.f32.mxu1 %v5230_v24  ;;  %3340 = vmatprep.subr.mxu1 %v3646_v8 }
  0x3c   :  { %3341 = vmatpush3.msra.mxu1 %v3646_v8  ;;  %v5233_v8 = vand.u32 4294901760, %v3868_v31 }
  0x3d   :  { %3249 = vmatmul.mubr.f32.vlgmr.msra.gmra.mxu0 %v3800_v39  ;;  %3342 = vmatprep.subr.mxu1 %v3653_v11 }
  0x3e   :  { %3287 = vmatmul.mubr.f32.gmra.mxu1 %v5231_v6  ;;  %3305 = vmatpush3.msra.mxu0 %v3674_v20  ;;  %v5234_v20 = vand.u32 4294901760, %v3939_v57 }
  0x3f   :  { %3251 = vmatprep.mubr.f32.mxu0 %v3814_v49  ;;  %3306 = vmatprep.subr.mxu0 %v3678_v21 }
  0x40   :  { %3289 = vmatprep.mubr.f32.mxu1 %v5232_v7  ;;  %3307 = vmatpush3.msra.mxu0 %v3678_v21  ;;  %v5235_v21 = vand.u32 4294901760, %v3944_v34 }
  0x41   :  { %3252 = vmatmul.mubr.f32.gmra.mxu0 %v3818_v52  ;;  %3308 = vmatprep.subr.mxu0 %v3681_v22 }
  0x42   :  { %3290 = vmatmul.mubr.f32.gmra.mxu1 %v5233_v8  ;;  %3254 = vmatprep.mubr.f32.mxu0 %v3838_v0 }
  0x43   :  { %3292 = vmatprep.mubr.f32.mxu1 %v5234_v20  ;;  %3343 = vmatpush3.msra.mxu1 %v3653_v11  ;;  %v5237_v11 = vand.u32 4294901760, %v3983_v16 }
  0x44   :  { %3309 = vmatpush3.msra.mxu0 %v3681_v22  ;;  %v5238_v22 = vand.u32 4294901760, %v3993_v9 }
  0x45   :  { %3255 = vmatmul.mubr.f32.gmra.mxu0 %v3841_v1  ;;  %3310 = vmatprep.subr.mxu0 %v3685_v23 }
  0x46   :  { %3293 = vmatmul.mubr.f32.gmra.mxu1 %v5235_v21  ;;  %3257 = vmatprep.mubr.f32.mxu0 %v3865_v30 }
  0x47   :  { %3295 = vmatprep.mubr.f32.mxu1 %v5236_v37  ;;  %3311 = vmatpush3.msra.mxu0 %v3685_v23 }
  0x49   :  { %3258 = vmatmul.mubr.f32.gmra.mxu0 %v3868_v31 }
  0x4a   :  { %3296 = vmatmul.mubr.f32.gmra.mxu1 %v5237_v11  ;;  %3260 = vmatprep.mubr.f32.mxu0 %v3939_v57 }
  0x4b   :  { %3298 = vmatprep.mubr.f32.mxu1 %v5238_v22 }
  0x4d   :  { %3261 = vmatmul.mubr.f32.gmra.mxu0 %v3944_v34 }
  0x4e   :  { %3299 = vmatmul.mubr.f32.gmra.mxu1 %v432_v62  ;;  %3263 = vmatprep.mubr.f32.mxu0 %v3979_v14 }
  0x4f   :  { %3301 = vmatprep.mubr.f32.mxu1 %v442_v18 }
  0x51   :  { %3264 = vmatmul.mubr.f32.gmra.mxu0 %v3983_v16 }
  0x52   :  { %3302 = vmatmul.mubr.f32.gmra.mxu1 %v452_v36  ;;  %3266 = vmatprep.mubr.f32.mxu0 %v3993_v9 }
  0x53   :  { %3344 = vmatprep.mubr.f32.mxu1 %v3781_v27 }
  0x55   :  { %3267 = vmatmul.mubr.f32.gmra.mxu0 %v4016_v26 }
  0x56   :  { %3345 = vmatmul.mubr.f32.vlgmr.msra.gmra.mxu1 %v3783_v28  ;;  %3269 = vmatprep.mubr.f32.mxu0 %v441_v15 }
  0x57   :  { %3347 = vmatprep.mubr.f32.mxu1 %v3803_v40 }
  0x59   :  { %3270 = vmatmul.mubr.f32.gmra.mxu0 %v451_v12 }
  0x5a   :  { %3348 = vmatmul.mubr.f32.gmra.mxu1 %v3805_v41  ;;  %3312 = vmatprep.mubr.f32.mxu0 %v3781_v27 }
  0x5b   :  { %3350 = vmatprep.mubr.f32.mxu1 %v3820_v53 }
  0x5d   :  { %3313 = vmatmul.mubr.f32.vlgmr.msra.gmra.mxu0 %v3783_v28 }
  0x5e   :  { %3351 = vmatmul.mubr.f32.gmra.mxu1 %v3822_v54  ;;  %3315 = vmatprep.mubr.f32.mxu0 %v3803_v40 }
  0x5f   :  { %3353 = vmatprep.mubr.f32.mxu1 %v3843_v2 }
  0x61   :  { %3316 = vmatmul.mubr.f32.gmra.mxu0 %v3805_v41 }
  0x62   :  { %3354 = vmatmul.mubr.f32.gmra.mxu1 %v3845_v3  ;;  %3318 = vmatprep.mubr.f32.mxu0 %v3820_v53 }
  0x63   :  { %3356 = vmatprep.mubr.f32.mxu1 %v3922_v19 }
  0x65   :  { %3319 = vmatmul.mubr.f32.gmra.mxu0 %v3822_v54 }
  0x66   :  { %3357 = vmatmul.mubr.f32.gmra.mxu1 %v3935_v42  ;;  %3321 = vmatprep.mubr.f32.mxu0 %v3843_v2 }
  0x67   :  { %3359 = vmatprep.mubr.f32.mxu1 %v3958_v32 }
  0x69   :  { %3322 = vmatmul.mubr.f32.gmra.mxu0 %v3845_v3 }
  0x6a   :  { %3360 = vmatmul.mubr.f32.gmra.mxu1 %v3960_v33  ;;  %3324 = vmatprep.mubr.f32.mxu0 %v3922_v19 }
  0x6b   :  { %3362 = vmatprep.mubr.f32.mxu1 %v3969_v44 }
  0x6d   :  { %3325 = vmatmul.mubr.f32.gmra.mxu0 %v3935_v42 }
  0x6e   :  { %3363 = vmatmul.mubr.f32.gmra.mxu1 %v4001_v13  ;;  %3327 = vmatprep.mubr.f32.mxu0 %v3958_v32 }
  0x6f   :  { %3365 = vmatprep.mubr.f32.mxu1 %v4024_v60 }
  0x71   :  { %3328 = vmatmul.mubr.f32.gmra.mxu0 %v3960_v33 }
  0x72   :  { %3366 = vmatmul.mubr.f32.gmra.mxu1 %v4030_v59  ;;  %3330 = vmatprep.mubr.f32.mxu0 %v3969_v44 }
  0x75   :  { %3331 = vmatmul.mubr.f32.gmra.mxu0 %v4001_v13 }
  0x76   :  { %3333 = vmatprep.mubr.f32.mxu0 %v4024_v60 }
  0x79   :  { %3334 = vmatmul.mubr.f32.gmra.mxu0 %v4030_v59 }
  0xd5   :  { %v4120_v23 = vpop.f32.mrf.mxu1 }
  0xd7   :  { %v4122_v27 = vpop.f32.mrf.mxu1 }
  0xd9   :  { %v4124_v28 = vpop.f32.mrf.mxu1 }
  0xdb   :  { %v559_v39 = vpop.f32.mrf.mxu1 }
  0xdd   :  { %v4126_v40 = vpop.f32.mrf.mxu0  ;;  %v3224_v41 = vpop.f32.mrf.mxu1 }
  0xdf   :  { %v4128_v49 = vpop.f32.mrf.mxu0  ;;  %v571_v52 = vpop.f32.mrf.mxu1 }
  0xe0   :  { %v548_v35 = vadd.f32 %v4122_v27, %v4128_v49 }
  0xe1   :  { %v4130_v53 = vpop.f32.mrf.mxu0 }
  0xe2   :  { %v3227_v54 = vpop.f32.mrf.mxu1 }
  0xe3   :  { %v326_v62 = vpop.f32.mrf.mxu0 }
  0xe4   :  { %v583_v0 = vpop.f32.mrf.mxu1  ;;  %v4132_v1 = vadd.f32 %v559_v39, %v326_v62 }
  0xe5   :  { %v3192_v2 = vpop.f32.mrf.mxu0 }
  0xe6   :  { %v3230_v3 = vpop.f32.mrf.mxu1  ;;  %v4134_v26 = vadd.f32 %v3224_v41, %v3192_v2 }
  0xe7   :  { %v346_v30 = vpop.f32.mrf.mxu0 }
  0xe8   :  { %v595_v31 = vpop.f32.mrf.mxu1  ;;  %v4136_v19 = vadd.f32 %v571_v52, %v346_v30 }
  0xe9   :  { %v3195_v42 = vpop.f32.mrf.mxu0 }
  0xea   :  { %v3233_v57 = vpop.f32.mrf.mxu1  ;;  %v4138_v34 = vadd.f32 %v3227_v54, %v3195_v42 }
  0xeb   :  { %v366_v13 = vpop.f32.mrf.mxu0 }
  0xec   :  { %v607_v32 = vpop.f32.mrf.mxu1  ;;  %v4140_v33 = vadd.f32 %v583_v0, %v366_v13 }
  0xed   :  { %v3198_v44 = vpop.f32.mrf.mxu0 }
  0xee   :  { %v3236_v14 = vpop.f32.mrf.mxu1  ;;  %v4142_v16 = vadd.f32 %v3230_v3, %v3198_v44 }
  0xef   :  { %v386_v9 = vpop.f32.mrf.mxu0 }
  0xf0   :  { %v619_v60 = vpop.f32.mrf.mxu1  ;;  %v4144_v15 = vadd.f32 %v595_v31, %v386_v9 }
  0xf1   :  { %v3201_v46 = vpop.f32.mrf.mxu0 }
  0xf2   :  { %v3239_v56 = vpop.f32.mrf.mxu1  ;;  %v614_v59 = vadd.f32 %v3233_v57, %v3201_v46 }
  0xf3   :  { %v406_v17 = vpop.f32.mrf.mxu0 }
  0xf4   :  { %v631_v18 = vpop.f32.mrf.mxu1  ;;  %v608_v12 = vadd.f32 %v607_v32, %v406_v17 }
  0xf5   :  { %v3204_v45 = vpop.f32.mrf.mxu0 }
  0xf6   :  { %v3282_v36 = vpop.f32.mrf.mxu1  ;;  %v626_v43 = vadd.f32 %v3236_v14, %v3204_v45 }
  0xf7   :  { %v426_v63 = vpop.f32.mrf.mxu0 }
  0xf8   :  { %v899_v29 = vpop.f32.mrf.mxu1  ;;  %v620_v48 = vadd.f32 %v619_v60, %v426_v63 }
  0xf9   :  { %v3207_v55 = vpop.f32.mrf.mxu0 }
  0xfa   :  { %v3285_v47 = vpop.f32.mrf.mxu1  ;;  %v638_v24 = vadd.f32 %v3239_v56, %v3207_v55 }
  0xfb   :  { %v446_v6 = vpop.f32.mrf.mxu0 }
  0xfc   :  { %v4146_v7 = vpop.f32.mrf.mxu1  ;;  %v632_v8 = vadd.f32 %v631_v18, %v446_v6  ;;  %v554_v18 = vadd.f32 %v4120_v23, %v4126_v40  ;;  %v566_v23 = vadd.f32 %v4124_v28, %v4130_v53 }
  0xfd   :  { %v3250_v20 = vpop.f32.mrf.mxu0 }
  0xfe   :  { %v4148_v21 = vpop.f32.mrf.mxu1  ;;  %v725_v4 = vadd.f32 %v3250_v20, %v554_v18 }
  0xff   :  { %v717_v37 = vpop.f32.mrf.mxu0 }
 0x100   :  { %v4150_v11 = vpop.f32.mrf.mxu1  ;;  %v908_v40 = vadd.f32 %v3282_v36, %v725_v4 }
 0x101   :  { %v3253_v22 = vpop.f32.mrf.mxu0 }
 0x102   :  { %v4152_v39 = vpop.f32.mrf.mxu1  ;;  %v739_v49 = vadd.f32 %v3253_v22, %v566_v23 }
 0x103   :  { %v731_v41 = vpop.f32.mrf.mxu0 }
 0x104   :  { %v4154_v52 = vpop.f32.mrf.mxu1  ;;  %v732_v36 = vadd.f32 %v731_v41, %v4132_v1 }
 0x105   :  { %v4156_v54 = vpop.f32.mrf.mxu0 }
 0x106   :  { %v4158_v62 = vpop.f32.mrf.mxu1  ;;  %v753_v18 = vadd.f32 %v4156_v54, %v4134_v26 }
 0x107   :  { %v4160_v0 = vpop.f32.mrf.mxu0 }
 0x108   :  { %v4162_v2 = vpop.f32.mrf.mxu1 }
 0x109   :  { %v4164_v3 = vpop.f32.mrf.mxu0 }
 0x10a   :  { %v3297_v30 = vpop.f32.mrf.mxu1 }
 0x10b   :  { %v4166_v31 = vpop.f32.mrf.mxu0 }
 0x10c   :  { %v979_v42 = vpop.f32.mrf.mxu1 }
 0x10d   :  { %v4168_v57 = vpop.f32.mrf.mxu0 }
 0x10e   :  { %v3300_v32 = vpop.f32.mrf.mxu1 }
 0x10f   :  { %v4170_v13 = vpop.f32.mrf.mxu0 }
 0x110   :  { %v995_v60 = vpop.f32.mrf.mxu1 }
 0x111   :  { %v3265_v44 = vpop.f32.mrf.mxu0 }
 0x112   :  { %v795_v14 = vadd.f32 %v3265_v44, %v614_v59  ;;  %v3303_v6 = vpop.f32.mrf.mxu1 }
 0x113   :  { %v787_v9 = vpop.f32.mrf.mxu0 }
 0x114   :  { %v4172_v46 = vadd.f32 %v3297_v30, %v795_v14  ;;  %v788_v56 = vadd.f32 %v787_v9, %v608_v12  ;;  %v718_v30 = vadd.f32 %v717_v37, %v548_v35  ;;  %v1011_v58 = vpop.f32.mrf.mxu1 }
 0x115   :  { %v3268_v17 = vpop.f32.mrf.mxu0 }
 0x116   :  { %v4176_v45 = vadd.f32 %v979_v42, %v788_v56  ;;  %v809_v63 = vadd.f32 %v3268_v17, %v626_v43  ;;  %v900_v27 = vadd.f32 %v899_v29, %v718_v30  ;;  %v924_v17 = vadd.f32 %v3285_v47, %v739_v49 }
 0x117   :  { %v801_v55 = vpop.f32.mrf.mxu0  ;;  %v767_v30 = vadd.f32 %v4164_v3, %v4138_v34 }
 0x118   :  { %v4180_v61 = vadd.f32 %v3300_v32, %v809_v63  ;;  %v802_v59 = vadd.f32 %v801_v55, %v620_v48  ;;  %v3346_v32 = vpop.f32.mrf.mxu1  ;;  %v746_v63 = vadd.f32 %v4160_v0, %v4136_v19 }
 0x119   :  { %v3271_v44 = vpop.f32.mrf.mxu0 }
 0x11a   :  { %v4182_v14 = vadd.f32 %v995_v60, %v802_v59  ;;  %v823_v12 = vadd.f32 %v3271_v44, %v638_v24  ;;  %v1267_v4 = vpop.f32.mrf.mxu1  ;;  %v940_v59 = vadd.f32 %v4148_v21, %v753_v18  ;;  %v932_v44 = vadd.f32 %v4150_v11, %v746_v63 }
 0x11b   :  { %v815_v9 = vpop.f32.mrf.mxu0 }
 0x11c   :  { %v4186_v43 = vadd.f32 %v3303_v6, %v823_v12  ;;  %v816_v42 = vadd.f32 %v815_v9, %v632_v8  ;;  %v3349_v53 = vpop.f32.mrf.mxu1  ;;  %v916_v8 = vadd.f32 %v4146_v7, %v732_v36  ;;  %v760_v12 = vadd.f32 %v4166_v31, %v4140_v33 }
 0x11d   :  { %v3314_v56 = vpop.f32.mrf.mxu0 }
 0x11e   :  { %v4188_v20 = vadd.f32 %v1011_v58, %v816_v42  ;;  %v1109_v48 = vadd.f32 %v3314_v56, %v908_v40  ;;  %v1279_v41 = vpop.f32.mrf.mxu1  ;;  %v956_v40 = vadd.f32 %v4152_v39, %v767_v30  ;;  %v948_v42 = vadd.f32 %v4154_v52, %v760_v12 }
 0x11f   :  { %v1102_v35 = vpop.f32.mrf.mxu0  ;;  %v781_v56 = vadd.f32 %v4168_v57, %v4142_v16 }
 0x120   :  { %v4190_v37 = vadd.f32 %v3346_v32, %v1109_v48  ;;  %v1103_v24 = vadd.f32 %v1102_v35, %v900_v27  ;;  %v3352_v6 = vpop.f32.mrf.mxu1  ;;  %v774_v27 = vadd.f32 %v4170_v13, %v4144_v15 }
 0x121   :  { %v3317_v60 = vpop.f32.mrf.mxu0  ;;  %v972_v32 = vadd.f32 %v4158_v62, %v781_v56 }
 0x122   :  { %1444 = vrot.lane.b32.xlu1 %v4190_v37, %s3588_s2  ;;  %1380 = vrot.lane.b32.xlu0 %v4190_v37, %s3589_s19  ;;  %v4196_v28 = vadd.f32 %v1267_v4, %v1103_v24  ;;  %v1121_v58 = vadd.f32 %v3317_v60, %v924_v17  ;;  %v1291_v54 = vpop.f32.mrf.mxu1  ;;  %v964_v35 = vadd.f32 %v4162_v2, %v774_v27 }
 0x123   :  { %v1114_v47 = vpop.f32.mrf.mxu0 }
 0x124   :  { %v4203_v29 = vadd.f32 %v3349_v53, %v1121_v58  ;;  %v1115_v22 = vadd.f32 %v1114_v47, %v916_v8  ;;  %v3355_v23 = vpop.f32.mrf.mxu1 }
 0x125   :  { %v3320_v1 = vpop.f32.mrf.mxu0 }
 0x126   :  { %1508 = vrot.lane.b32.xlu1 %v4190_v37, %s3590_s20  ;;  %1378 = vrot.lane.b32.xlu0 %v4196_v28, %s3589_s19  ;;  %v4218_v7 = vadd.f32 %v1279_v41, %v1115_v22  ;;  %v1133_v26 = vadd.f32 %v3320_v1, %v940_v59  ;;  %v1303_v3 = vpop.f32.mrf.mxu1 }
 0x127   :  { %v1126_v55 = vpop.f32.mrf.mxu0 }
 0x128   :  { %v1127_v19 = vadd.f32 %v1126_v55, %v932_v44  ;;  %v4230_v0 = vadd.f32 %v3352_v6, %v1133_v26  ;;  %v3358_v48 = vpop.f32.mrf.mxu1 }
 0x129   :  { %v3323_v11 = vpop.f32.mrf.mxu0 }
 0x12a   :  { %1384 = vrot.lane.b32.xlu1 %v4203_v29, %s3589_s19  ;;  %1442 = vrot.lane.b32.xlu0 %v4196_v28, %s3588_s2  ;;  %v4232_v21 = vadd.f32 %v1291_v54, %v1127_v19  ;;  %v1145_v34 = vadd.f32 %v3323_v11, %v956_v40  ;;  %v1315_v57 = vpop.f32.mrf.mxu1 }
 0x12b   :  { %v1138_v9 = vpop.f32.mrf.mxu0 }
 0x12c   :  { %v1139_v33 = vadd.f32 %v1138_v9, %v948_v42  ;;  %v4252_v31 = vadd.f32 %v3355_v23, %v1145_v34  ;;  %v3361_v60 = vpop.f32.mrf.mxu1 }
 0x12d   :  { %v3326_v52 = vpop.f32.mrf.mxu0 }
 0x12e   :  { %1448 = vrot.lane.b32.xlu1 %v4203_v29, %s3588_s2  ;;  %1506 = vrot.lane.b32.xlu0 %v4196_v28, %s3590_s20  ;;  %v4254_v39 = vadd.f32 %v1303_v3, %v1139_v33  ;;  %v1157_v16 = vadd.f32 %v3326_v52, %v972_v32  ;;  %v1327_v58 = vpop.f32.mrf.mxu1 }
 0x12f   :  { %v1150_v49 = vpop.f32.mrf.mxu0 }
 0x130   :  { %v1151_v15 = vadd.f32 %v1150_v49, %v964_v35  ;;  %v4274_v13 = vadd.f32 %v3358_v48, %v1157_v16 }
 0x131   :  { %v3329_v2 = vpop.f32.mrf.mxu0 }
 0x132   :  { %1512 = vrot.lane.b32.xlu1 %v4203_v29, %s3590_s20  ;;  %1446 = vrot.lane.b32.xlu0 %v4218_v7, %s3588_s2  ;;  %v4276_v62 = vadd.f32 %v1315_v57, %v1151_v15  ;;  %v1169_v17 = vadd.f32 %v3329_v2, %v4172_v46 }
 0x133   :  { %v1162_v24 = vpop.f32.mrf.mxu0 }
 0x134   :  { %v1163_v4 = vadd.f32 %v1162_v24, %v4176_v45  ;;  %v4292_v53 = vadd.f32 %v3361_v60, %v1169_v17  ;;  %v3364_v45 = vpop.f32.mrf.mxu1 }
 0x135   :  { %v3332_v47 = vpop.f32.mrf.mxu0 }
 0x136   :  { %1382 = vrot.lane.b32.xlu1 %v4218_v7, %s3589_s19  ;;  %1510 = vrot.lane.b32.xlu0 %v4218_v7, %s3590_s20  ;;  %v4294_v36 = vadd.f32 %v1327_v58, %v1163_v4  ;;  %v1181_v8 = vadd.f32 %v3332_v47, %v4180_v61  ;;  %v1339_v1 = vpop.f32.mrf.mxu1 }
 0x137   :  { %v1174_v46 = vpop.f32.mrf.mxu0 }
 0x138   :  { %v1175_v22 = vadd.f32 %v1174_v46, %v4182_v14  ;;  %v4310_v41 = vadd.f32 %v3364_v45, %v1181_v8  ;;  %v3367_v14 = vpop.f32.mrf.mxu1 }
 0x139   :  { %v3335_v63 = vpop.f32.mrf.mxu0 }
 0x13a   :  { %1388 = vrot.lane.b32.xlu1 %v4230_v0, %s3589_s19  ;;  %1386 = vrot.lane.b32.xlu0 %v4232_v21, %s3589_s19  ;;  %v4312_v18 = vadd.f32 %v1339_v1, %v1175_v22  ;;  %v1193_v55 = vadd.f32 %v3335_v63, %v4186_v43  ;;  %v1351_v59 = vpop.f32.mrf.mxu1 }
 0x13b   :  { %v1186_v61 = vpop.f32.mrf.mxu0 }
 0x13c   :  { %v1187_v6 = vadd.f32 %v1186_v61, %v4188_v20  ;;  %v4328_v44 = vadd.f32 %v3367_v14, %v1193_v55 }
 0x13e   :  { %1452 = vrot.lane.b32.xlu1 %v4230_v0, %s3588_s2  ;;  %1450 = vrot.lane.b32.xlu0 %v4232_v21, %s3588_s2  ;;  %v4330_v26 = vadd.f32 %v1351_v59, %v1187_v6 }
 0x142   :  { %1516 = vrot.lane.b32.xlu1 %v4230_v0, %s3590_s20  ;;  %1514 = vrot.lane.b32.xlu0 %v4232_v21, %s3590_s20 }
 0x146   :  { %1392 = vrot.lane.b32.xlu1 %v4252_v31, %s3589_s19  ;;  %1390 = vrot.lane.b32.xlu0 %v4254_v39, %s3589_s19 }
 0x14a   :  { %1456 = vrot.lane.b32.xlu1 %v4252_v31, %s3588_s2  ;;  %1454 = vrot.lane.b32.xlu0 %v4254_v39, %s3588_s2 }
 0x14e   :  { %1520 = vrot.lane.b32.xlu1 %v4252_v31, %s3590_s20  ;;  %1518 = vrot.lane.b32.xlu0 %v4254_v39, %s3590_s20 }
 0x152   :  { %1396 = vrot.lane.b32.xlu1 %v4274_v13, %s3589_s19  ;;  %1394 = vrot.lane.b32.xlu0 %v4276_v62, %s3589_s19 }
 0x156   :  { %1460 = vrot.lane.b32.xlu1 %v4274_v13, %s3588_s2  ;;  %1458 = vrot.lane.b32.xlu0 %v4276_v62, %s3588_s2 }
 0x15a   :  { %1524 = vrot.lane.b32.xlu1 %v4274_v13, %s3590_s20  ;;  %1522 = vrot.lane.b32.xlu0 %v4276_v62, %s3590_s20 }
 0x15e   :  { %1400 = vrot.lane.b32.xlu1 %v4292_v53, %s3589_s19  ;;  %1398 = vrot.lane.b32.xlu0 %v4294_v36, %s3589_s19 }
 0x162   :  { %1464 = vrot.lane.b32.xlu1 %v4292_v53, %s3588_s2  ;;  %1462 = vrot.lane.b32.xlu0 %v4294_v36, %s3588_s2 }
 0x166   :  { %1528 = vrot.lane.b32.xlu1 %v4292_v53, %s3590_s20  ;;  %1526 = vrot.lane.b32.xlu0 %v4294_v36, %s3590_s20 }
 0x16a   :  { %1404 = vrot.lane.b32.xlu1 %v4310_v41, %s3589_s19  ;;  %1402 = vrot.lane.b32.xlu0 %v4312_v18, %s3589_s19 }
 0x16e   :  { %1468 = vrot.lane.b32.xlu1 %v4310_v41, %s3588_s2  ;;  %1466 = vrot.lane.b32.xlu0 %v4312_v18, %s3588_s2 }
 0x172   :  { %1532 = vrot.lane.b32.xlu1 %v4310_v41, %s3590_s20  ;;  %1530 = vrot.lane.b32.xlu0 %v4312_v18, %s3590_s20 }
 0x176   :  { %1408 = vrot.lane.b32.xlu1 %v4328_v44, %s3589_s19  ;;  %1406 = vrot.lane.b32.xlu0 %v4330_v26, %s3589_s19 }
 0x17a   :  { %1472 = vrot.lane.b32.xlu1 %v4328_v44, %s3588_s2  ;;  %1470 = vrot.lane.b32.xlu0 %v4330_v26, %s3588_s2 }
 0x17e   :  { %1536 = vrot.lane.b32.xlu1 %v4328_v44, %s3590_s20  ;;  %1534 = vrot.lane.b32.xlu0 %v4330_v26, %s3590_s20 }
 0x194   :  { %v1445_v43 = vpop.permute.xlu1 %1444  ;;  %v1381_v20 = vpop.permute.xlu0 %1380 }
 0x195   :  { %v1427_v19 = vmax.f32 %v4190_v37, %v1381_v20 }
 0x197   :  { %v1491_v54 = vmax.f32 %v1427_v19, %v1445_v43 }
 0x198   :  { %v1509_v11 = vpop.permute.xlu1 %1508  ;;  %v1379_v30 = vpop.permute.xlu0 %1378 }
 0x199   :  { %v4345_v12 = vmax.f32 %v1491_v54, %v1509_v11  ;;  %v1426_v40 = vmax.f32 %v4196_v28, %v1379_v30 }
 0x19b   :  { %1636 = vrot.lane.b32.xlu1 %v4345_v12, %s3591_s21 }
 0x19c   :  { %v1385_v9 = vpop.permute.xlu1 %1384  ;;  %v1443_v23 = vpop.permute.xlu0 %1442 }
 0x19d   :  { %v1490_v42 = vmax.f32 %v1426_v40, %v1443_v23  ;;  %v1429_v3 = vmax.f32 %v4203_v29, %v1385_v9 }
 0x19f   :  { %1732 = vrot.lane.b32.xlu1 %v4345_v12, %s3592_s22 }
 0x1a0   :  { %v1449_v34 = vpop.permute.xlu1 %1448  ;;  %v1507_v33 = vpop.permute.xlu0 %1506 }
 0x1a1   :  { %v4353_v52 = vmax.f32 %v1490_v42, %v1507_v33  ;;  %v1493_v56 = vmax.f32 %v1429_v3, %v1449_v34 }
 0x1a3   :  { %1828 = vrot.lane.b32.xlu1 %v4345_v12, %s3593_s23  ;;  %1634 = vrot.lane.b32.xlu0 %v4353_v52, %s3591_s21 }
 0x1a4   :  { %v1513_v27 = vpop.permute.xlu1 %1512  ;;  %v1447_v49 = vpop.permute.xlu0 %1446 }
 0x1a5   :  { %v4359_v48 = vmax.f32 %v1493_v56, %v1513_v27 }
 0x1a7   :  { %1640 = vrot.lane.b32.xlu1 %v4359_v48, %s3591_s21  ;;  %1730 = vrot.lane.b32.xlu0 %v4353_v52, %s3592_s22 }
 0x1a8   :  { %v1383_v32 = vpop.permute.xlu1 %1382  ;;  %v1511_v35 = vpop.permute.xlu0 %1510 }
 0x1a9   :  { %v1428_v16 = vmax.f32 %v4218_v7, %v1383_v32 }
 0x1ab   :  { %v1492_v15 = vmax.f32 %v1428_v16, %v1447_v49  ;;  %1736 = vrot.lane.b32.xlu1 %v4359_v48, %s3592_s22  ;;  %1826 = vrot.lane.b32.xlu0 %v4353_v52, %s3593_s23 }
 0x1ac   :  { %v1389_v57 = vpop.permute.xlu1 %1388  ;;  %v1387_v2 = vpop.permute.xlu0 %1386 }
 0x1ad   :  { %v4370_v24 = vmax.f32 %v1492_v15, %v1511_v35  ;;  %v1431_v4 = vmax.f32 %v4230_v0, %v1389_v57  ;;  %v1430_v45 = vmax.f32 %v4232_v21, %v1387_v2 }
 0x1af   :  { %1832 = vrot.lane.b32.xlu1 %v4359_v48, %s3593_s23  ;;  %1638 = vrot.lane.b32.xlu0 %v4370_v24, %s3591_s21 }
 0x1b0   :  { %v1453_v60 = vpop.permute.xlu1 %1452  ;;  %v1451_v17 = vpop.permute.xlu0 %1450 }
 0x1b1   :  { %v1495_v58 = vmax.f32 %v1431_v4, %v1453_v60  ;;  %v1494_v22 = vmax.f32 %v1430_v45, %v1451_v17 }
 0x1b3   :  { %1734 = vrot.lane.b32.xlu0 %v4370_v24, %s3592_s22 }
 0x1b4   :  { %v1517_v47 = vpop.permute.xlu1 %1516  ;;  %v1515_v46 = vpop.permute.xlu0 %1514 }
 0x1b5   :  { %v4380_v8 = vmax.f32 %v1495_v58, %v1517_v47  ;;  %v4386_v61 = vmax.f32 %v1494_v22, %v1515_v46 }
 0x1b7   :  { %1644 = vrot.lane.b32.xlu1 %v4380_v8, %s3591_s21  ;;  %1830 = vrot.lane.b32.xlu0 %v4370_v24, %s3593_s23 }
 0x1b8   :  { %v1393_v1 = vpop.permute.xlu1 %1392  ;;  %v1391_v63 = vpop.permute.xlu0 %1390 }
 0x1b9   :  { %v1433_v6 = vmax.f32 %v4252_v31, %v1393_v1  ;;  %v1432_v19 = vmax.f32 %v4254_v39, %v1391_v63 }
 0x1bb   :  { %1740 = vrot.lane.b32.xlu1 %v4380_v8, %s3592_s22  ;;  %1642 = vrot.lane.b32.xlu0 %v4386_v61, %s3591_s21 }
 0x1bc   :  { %v1457_v14 = vpop.permute.xlu1 %1456  ;;  %v1455_v55 = vpop.permute.xlu0 %1454 }
 0x1bd   :  { %v1497_v59 = vmax.f32 %v1433_v6, %v1457_v14  ;;  %v1496_v11 = vmax.f32 %v1432_v19, %v1455_v55 }
 0x1bf   :  { %1836 = vrot.lane.b32.xlu1 %v4380_v8, %s3593_s23  ;;  %1738 = vrot.lane.b32.xlu0 %v4386_v61, %s3592_s22 }
 0x1c0   :  { %v1521_v43 = vpop.permute.xlu1 %1520  ;;  %v1519_v20 = vpop.permute.xlu0 %1518 }
 0x1c1   :  { %v4398_v54 = vmax.f32 %v1497_v59, %v1521_v43  ;;  %v4404_v23 = vmax.f32 %v1496_v11, %v1519_v20 }
 0x1c3   :  { %1648 = vrot.lane.b32.xlu1 %v4398_v54, %s3591_s21  ;;  %1834 = vrot.lane.b32.xlu0 %v4386_v61, %s3593_s23 }
 0x1c4   :  { %v1397_v30 = vpop.permute.xlu1 %1396  ;;  %v1395_v9 = vpop.permute.xlu0 %1394 }
 0x1c5   :  { %v1435_v34 = vmax.f32 %v4274_v13, %v1397_v30  ;;  %v1434_v27 = vmax.f32 %v4276_v62, %v1395_v9 }
 0x1c7   :  { %1744 = vrot.lane.b32.xlu1 %v4398_v54, %s3592_s22  ;;  %1646 = vrot.lane.b32.xlu0 %v4404_v23, %s3591_s21 }
 0x1c8   :  { %v1461_v40 = vpop.permute.xlu1 %1460  ;;  %v1459_v42 = vpop.permute.xlu0 %1458 }
 0x1c9   :  { %v1499_v33 = vmax.f32 %v1435_v34, %v1461_v40  ;;  %v1498_v32 = vmax.f32 %v1434_v27, %v1459_v42 }
 0x1cb   :  { %1840 = vrot.lane.b32.xlu1 %v4398_v54, %s3593_s23  ;;  %1742 = vrot.lane.b32.xlu0 %v4404_v23, %s3592_s22 }
 0x1cc   :  { %v1525_v3 = vpop.permute.xlu1 %1524  ;;  %v1523_v56 = vpop.permute.xlu0 %1522 }
 0x1cd   :  { %v4416_v49 = vmax.f32 %v1499_v33, %v1525_v3  ;;  %v4422_v15 = vmax.f32 %v1498_v32, %v1523_v56 }
 0x1cf   :  { %1652 = vrot.lane.b32.xlu1 %v4416_v49, %s3591_s21  ;;  %1838 = vrot.lane.b32.xlu0 %v4404_v23, %s3593_s23 }
 0x1d0   :  { %v1401_v35 = vpop.permute.xlu1 %1400  ;;  %v1399_v16 = vpop.permute.xlu0 %1398 }
 0x1d1   :  { %v1437_v60 = vmax.f32 %v4292_v53, %v1401_v35  ;;  %v1436_v47 = vmax.f32 %v4294_v36, %v1399_v16 }
 0x1d3   :  { %1748 = vrot.lane.b32.xlu1 %v4416_v49, %s3592_s22  ;;  %1650 = vrot.lane.b32.xlu0 %v4422_v15, %s3591_s21 }
 0x1d4   :  { %v1465_v57 = vpop.permute.xlu1 %1464  ;;  %v1463_v2 = vpop.permute.xlu0 %1462 }
 0x1d5   :  { %v1501_v17 = vmax.f32 %v1437_v60, %v1465_v57  ;;  %v1500_v45 = vmax.f32 %v1436_v47, %v1463_v2 }
 0x1d7   :  { %1844 = vrot.lane.b32.xlu1 %v4416_v49, %s3593_s23  ;;  %1746 = vrot.lane.b32.xlu0 %v4422_v15, %s3592_s22 }
 0x1d8   :  { %v1529_v4 = vpop.permute.xlu1 %1528  ;;  %v1527_v58 = vpop.permute.xlu0 %1526 }
 0x1d9   :  { %v4434_v46 = vmax.f32 %v1501_v17, %v1529_v4  ;;  %v4440_v63 = vmax.f32 %v1500_v45, %v1527_v58 }
 0x1db   :  { %1656 = vrot.lane.b32.xlu1 %v4434_v46, %s3591_s21  ;;  %1842 = vrot.lane.b32.xlu0 %v4422_v15, %s3593_s23 }
 0x1dc   :  { %v1405_v22 = vpop.permute.xlu1 %1404  ;;  %v1403_v1 = vpop.permute.xlu0 %1402 }
 0x1dd   :  { %v1439_v6 = vmax.f32 %v4310_v41, %v1405_v22  ;;  %v1438_v19 = vmax.f32 %v4312_v18, %v1403_v1 }
 0x1df   :  { %1752 = vrot.lane.b32.xlu1 %v4434_v46, %s3592_s22  ;;  %1654 = vrot.lane.b32.xlu0 %v4440_v63, %s3591_s21 }
 0x1e0   :  { %v1469_v14 = vpop.permute.xlu1 %1468  ;;  %v1467_v55 = vpop.permute.xlu0 %1466 }
 0x1e1   :  { %v1503_v59 = vmax.f32 %v1439_v6, %v1469_v14  ;;  %v1502_v30 = vmax.f32 %v1438_v19, %v1467_v55 }
 0x1e3   :  { %1848 = vrot.lane.b32.xlu1 %v4434_v46, %s3593_s23  ;;  %1750 = vrot.lane.b32.xlu0 %v4440_v63, %s3592_s22 }
 0x1e4   :  { %v1533_v43 = vpop.permute.xlu1 %1532  ;;  %v1531_v20 = vpop.permute.xlu0 %1530 }
 0x1e5   :  { %v4452_v11 = vmax.f32 %v1503_v59, %v1533_v43  ;;  %v4458_v42 = vmax.f32 %v1502_v30, %v1531_v20 }
 0x1e7   :  { %1660 = vrot.lane.b32.xlu1 %v4452_v11, %s3591_s21  ;;  %1846 = vrot.lane.b32.xlu0 %v4440_v63, %s3593_s23 }
 0x1e8   :  { %v1409_v9 = vpop.permute.xlu1 %1408  ;;  %v1407_v40 = vpop.permute.xlu0 %1406 }
 0x1e9   :  { %v1441_v3 = vmax.f32 %v4328_v44, %v1409_v9  ;;  %v1440_v32 = vmax.f32 %v4330_v26, %v1407_v40 }
 0x1eb   :  { %1756 = vrot.lane.b32.xlu1 %v4452_v11, %s3592_s22  ;;  %1658 = vrot.lane.b32.xlu0 %v4458_v42, %s3591_s21 }
 0x1ec   :  { %v1473_v34 = vpop.permute.xlu1 %1472  ;;  %v1471_v33 = vpop.permute.xlu0 %1470 }
 0x1ed   :  { %v1505_v56 = vmax.f32 %v1441_v3, %v1473_v34  ;;  %v1504_v57 = vmax.f32 %v1440_v32, %v1471_v33 }
 0x1ef   :  { %1852 = vrot.lane.b32.xlu1 %v4452_v11, %s3593_s23  ;;  %1754 = vrot.lane.b32.xlu0 %v4458_v42, %s3592_s22 }
 0x1f0   :  { %v1537_v27 = vpop.permute.xlu1 %1536  ;;  %v1535_v16 = vpop.permute.xlu0 %1534 }
 0x1f1   :  { %v4470_v35 = vmax.f32 %v1505_v56, %v1537_v27  ;;  %v4476_v2 = vmax.f32 %v1504_v57, %v1535_v16 }
 0x1f3   :  { %1664 = vrot.lane.b32.xlu1 %v4470_v35, %s3591_s21  ;;  %1850 = vrot.lane.b32.xlu0 %v4458_v42, %s3593_s23 }
 0x1f7   :  { %1760 = vrot.lane.b32.xlu1 %v4470_v35, %s3592_s22  ;;  %1662 = vrot.lane.b32.xlu0 %v4476_v2, %s3591_s21 }
 0x1fb   :  { %1856 = vrot.lane.b32.xlu1 %v4470_v35, %s3593_s23  ;;  %1758 = vrot.lane.b32.xlu0 %v4476_v2, %s3592_s22 }
 0x1ff   :  { %1854 = vrot.lane.b32.xlu0 %v4476_v2, %s3593_s23 }
 0x20d   :  { %v1637_v60 = vpop.permute.xlu1 %1636 }
 0x20e   :  { %v1683_v17 = vsub.f32 %v4190_v37, %v1637_v60 }
 0x210   :  { %v1700_v4 = vmul.f32 1.442695, %v1683_v17 }
 0x211   :  { %v1733_v58 = vpop.permute.xlu1 %1732 }
 0x212   :  { %3426 = vpow2.f32 %v1700_v4  ;;  %v1779_v47 = vsub.f32 %v4190_v37, %v1733_v58 }
 0x214   :  { %v1796_v45 = vmul.f32 1.442695, %v1779_v47 }
 0x215   :  { %v1829_v22 = vpop.permute.xlu1 %1828  ;;  %v1635_v1 = vpop.permute.xlu0 %1634 }
 0x216   :  { %3428 = vpow2.f32 %v1796_v45  ;;  %v1875_v14 = vsub.f32 %v4190_v37, %v1829_v22  ;;  %v1682_v55 = vsub.f32 %v4196_v28, %v1635_v1 }
 0x218   :  { %v1892_v6 = vmul.f32 1.442695, %v1875_v14  ;;  %v1698_v59 = vmul.f32 1.442695, %v1682_v55 }
 0x219   :  { %v1641_v43 = vpop.permute.xlu1 %1640  ;;  %v1731_v20 = vpop.permute.xlu0 %1730 }
 0x21a   :  { %3430 = vpow2.f32 %v1892_v6  ;;  %v1685_v19 = vsub.f32 %v4203_v29, %v1641_v43  ;;  %v1778_v30 = vsub.f32 %v4196_v28, %v1731_v20 }
 0x21b   :  { %3432 = vpow2.f32 %v1698_v59 }
 0x21c   :  { %v1704_v9 = vmul.f32 1.442695, %v1685_v19  ;;  %v1794_v40 = vmul.f32 1.442695, %v1778_v30 }
 0x21d   :  { %v1737_v34 = vpop.permute.xlu1 %1736  ;;  %v1827_v33 = vpop.permute.xlu0 %1826 }
 0x21e   :  { %3434 = vpow2.f32 %v1704_v9  ;;  %v1781_v3 = vsub.f32 %v4203_v29, %v1737_v34  ;;  %v1874_v56 = vsub.f32 %v4196_v28, %v1827_v33 }
 0x21f   :  { %v4496_v27 = vpop.eup %3426  ;;  %3436 = vpow2.f32 %v1794_v40 }
 0x220   :  { %v1800_v32 = vmul.f32 1.442695, %v1781_v3  ;;  %v1890_v16 = vmul.f32 1.442695, %v1874_v56  ;;  %1940 = vrot.lane.b32.xlu1 %v4496_v27, %s3589_s19 }
 0x221   :  { %v1833_v57 = vpop.permute.xlu1 %1832  ;;  %v1639_v60 = vpop.permute.xlu0 %1638 }
 0x222   :  { %3438 = vpow2.f32 %v1800_v32  ;;  %v1877_v17 = vsub.f32 %v4203_v29, %v1833_v57  ;;  %v1684_v4 = vsub.f32 %v4218_v7, %v1639_v60 }
 0x223   :  { %v4502_v58 = vpop.eup %3428  ;;  %3440 = vpow2.f32 %v1890_v16 }
 0x224   :  { %v1896_v47 = vmul.f32 1.442695, %v1877_v17  ;;  %v1702_v45 = vmul.f32 1.442695, %v1684_v4  ;;  %2020 = vrot.lane.b32.xlu1 %v4502_v58, %s3588_s2 }
 0x225   :  { %v1735_v22 = vpop.permute.xlu0 %1734 }
 0x226   :  { %3442 = vpow2.f32 %v1896_v47  ;;  %v1780_v1 = vsub.f32 %v4218_v7, %v1735_v22 }
 0x227   :  { %v4507_v14 = vpop.eup %3430  ;;  %3444 = vpow2.f32 %v1702_v45 }
 0x228   :  { %v4509_v55 = vpop.eup %3432  ;;  %v1798_v6 = vmul.f32 1.442695, %v1780_v1  ;;  %2100 = vrot.lane.b32.xlu1 %v4507_v14, %s3590_s20 }
 0x229   :  { %1938 = vrot.lane.b32.xlu0 %v4509_v55, %s3589_s19  ;;  %v1645_v59 = vpop.permute.xlu1 %1644  ;;  %v1831_v43 = vpop.permute.xlu0 %1830 }
 0x22a   :  { %3446 = vpow2.f32 %v1798_v6  ;;  %v1687_v20 = vsub.f32 %v4230_v0, %v1645_v59  ;;  %v1876_v19 = vsub.f32 %v4218_v7, %v1831_v43  ;;  %v3594_v6 = vmov 0  }
 0x22b   :  { %v4517_v30 = vpop.eup %3434  ;;  %3379 = vset.pattern.permute.xlu1 %v3594_v6  ;;  %3380 = vset.pattern.permute.xlu0 %v3594_v6 }
 0x22c   :  { %v4519_v9 = vpop.eup %3436  ;;  %v1708_v40 = vmul.f32 1.442695, %v1687_v20  ;;  %v1894_v34 = vmul.f32 1.442695, %v1876_v19  ;;  %1944 = vrot.lane.b32.xlu1 %v4517_v30, %s3589_s19 }
 0x22d   :  { %2018 = vrot.lane.b32.xlu0 %v4519_v9, %s3588_s2  ;;  %v1741_v33 = vpop.permute.xlu1 %1740  ;;  %v1643_v3 = vpop.permute.xlu0 %1642 }
 0x22e   :  { %3448 = vpow2.f32 %v1708_v40  ;;  %v1783_v56 = vsub.f32 %v4230_v0, %v1741_v33  ;;  %v1686_v32 = vsub.f32 %v4232_v21, %v1643_v3 }
 0x22f   :  { %v4527_v16 = vpop.eup %3438  ;;  %3450 = vpow2.f32 %v1894_v34 }
 0x230   :  { %v4529_v57 = vpop.eup %3440  ;;  %v1804_v60 = vmul.f32 1.442695, %v1783_v56  ;;  %v1706_v17 = vmul.f32 1.442695, %v1686_v32  ;;  %2024 = vrot.lane.b32.xlu1 %v4527_v16, %s3588_s2 }
 0x231   :  { %2098 = vrot.lane.b32.xlu0 %v4529_v57, %s3590_s20  ;;  %v1837_v4 = vpop.permute.xlu1 %1836  ;;  %v1739_v47 = vpop.permute.xlu0 %1738 }
 0x232   :  { %3452 = vpow2.f32 %v1804_v60  ;;  %v1879_v45 = vsub.f32 %v4230_v0, %v1837_v4  ;;  %v1782_v22 = vsub.f32 %v4232_v21, %v1739_v47 }
 0x233   :  { %v4537_v1 = vpop.eup %3442  ;;  %3454 = vpow2.f32 %v1706_v17 }
 0x234   :  { %v4539_v59 = vpop.eup %3444  ;;  %v1900_v43 = vmul.f32 1.442695, %v1879_v45  ;;  %v1802_v20 = vmul.f32 1.442695, %v1782_v22  ;;  %2104 = vrot.lane.b32.xlu1 %v4537_v1, %s3590_s20 }
 0x235   :  { %1942 = vrot.lane.b32.xlu0 %v4539_v59, %s3589_s19  ;;  %v1649_v19 = vpop.permute.xlu1 %1648  ;;  %v1835_v40 = vpop.permute.xlu0 %1834 }
 0x236   :  { %3456 = vpow2.f32 %v1900_v43  ;;  %v1689_v34 = vsub.f32 %v4252_v31, %v1649_v19  ;;  %v1878_v33 = vsub.f32 %v4232_v21, %v1835_v40 }
 0x237   :  { %v4547_v3 = vpop.eup %3446  ;;  %3458 = vpow2.f32 %v1802_v20 }
 0x238   :  { %v1712_v56 = vmul.f32 1.442695, %v1689_v34  ;;  %v1898_v32 = vmul.f32 1.442695, %v1878_v33 }
 0x239   :  { %2022 = vrot.lane.b32.xlu0 %v4547_v3, %s3588_s2  ;;  %v1745_v60 = vpop.permute.xlu1 %1744  ;;  %v1647_v17 = vpop.permute.xlu0 %1646 }
 0x23a   :  { %3460 = vpow2.f32 %v1712_v56  ;;  %v1785_v4 = vsub.f32 %v4252_v31, %v1745_v60  ;;  %v1688_v47 = vsub.f32 %v4254_v39, %v1647_v17 }
 0x23b   :  { %v4553_v45 = vpop.eup %3448  ;;  %3462 = vpow2.f32 %v1898_v32 }
 0x23c   :  { %v4555_v22 = vpop.eup %3450  ;;  %v1808_v6 = vmul.f32 1.442695, %v1785_v4  ;;  %v1710_v43 = vmul.f32 1.442695, %v1688_v47  ;;  %1948 = vrot.lane.b32.xlu1 %v4553_v45, %s3589_s19 }
 0x23d   :  { %2102 = vrot.lane.b32.xlu0 %v4555_v22, %s3590_s20  ;;  %v1841_v20 = vpop.permute.xlu1 %1840  ;;  %v1743_v19 = vpop.permute.xlu0 %1742 }
 0x23e   :  { %3464 = vpow2.f32 %v1808_v6  ;;  %v1881_v40 = vsub.f32 %v4252_v31, %v1841_v20  ;;  %v1784_v34 = vsub.f32 %v4254_v39, %v1743_v19 }
 0x23f   :  { %v4563_v33 = vpop.eup %3452  ;;  %3466 = vpow2.f32 %v1710_v43 }
 0x240   :  { %v4565_v56 = vpop.eup %3454  ;;  %v1904_v32 = vmul.f32 1.442695, %v1881_v40  ;;  %v1806_v60 = vmul.f32 1.442695, %v1784_v34  ;;  %2028 = vrot.lane.b32.xlu1 %v4563_v33, %s3588_s2 }
 0x241   :  { %1946 = vrot.lane.b32.xlu0 %v4565_v56, %s3589_s19  ;;  %v1653_v17 = vpop.permute.xlu1 %1652  ;;  %v1839_v4 = vpop.permute.xlu0 %1838 }
 0x242   :  { %3468 = vpow2.f32 %v1904_v32  ;;  %v1691_v47 = vsub.f32 %v4274_v13, %v1653_v17  ;;  %v1880_v6 = vsub.f32 %v4254_v39, %v1839_v4 }
 0x243   :  { %v4573_v20 = vpop.eup %3456  ;;  %3470 = vpow2.f32 %v1806_v60 }
 0x244   :  { %v4575_v43 = vpop.eup %3458  ;;  %v1716_v19 = vmul.f32 1.442695, %v1691_v47  ;;  %v1902_v40 = vmul.f32 1.442695, %v1880_v6  ;;  %2108 = vrot.lane.b32.xlu1 %v4573_v20, %s3590_s20 }
 0x245   :  { %2026 = vrot.lane.b32.xlu0 %v4575_v43, %s3588_s2  ;;  %v1749_v34 = vpop.permute.xlu1 %1748  ;;  %v1651_v5 = vpop.permute.xlu0 %1650 }
 0x246   :  { %3472 = vpow2.f32 %v1716_v19  ;;  %v1787_v32 = vsub.f32 %v4274_v13, %v1749_v34  ;;  %v1690_v17 = vsub.f32 %v4276_v62, %v1651_v5 }
 0x247   :  { %v4583_v4 = vpop.eup %3460  ;;  %3474 = vpow2.f32 %v1902_v40 }
 0x248   :  { %5239 = vst [vmem:[#allocation12_spill] sm:$0xff] %v4583_v4  ;;  %v4585_v60 = vpop.eup %3462  ;;  %v1812_v47 = vmul.f32 1.442695, %v1787_v32  ;;  %v1714_v6 = vmul.f32 1.442695, %v1690_v17  ;;  %1952 = vrot.lane.b32.xlu1 %v4583_v4, %s3589_s19 }
 0x249   :  { %5240 = vst [vmem:[#allocation13_spill] sm:$0xff] %v4585_v60  ;;  %2106 = vrot.lane.b32.xlu0 %v4585_v60, %s3590_s20  ;;  %v1845_v51 = vpop.permute.xlu1 %1844  ;;  %v1747_v50 = vpop.permute.xlu0 %1746 }
 0x24a   :  { %3476 = vpow2.f32 %v1812_v47  ;;  %v1883_v19 = vsub.f32 %v4274_v13, %v1845_v51  ;;  %v1786_v5 = vsub.f32 %v4276_v62, %v1747_v50 }
 0x24b   :  { %v4593_v34 = vpop.eup %3464  ;;  %3478 = vpow2.f32 %v1714_v6 }
 0x24c   :  { %v4595_v40 = vpop.eup %3466  ;;  %v1908_v32 = vmul.f32 1.442695, %v1883_v19  ;;  %v1810_v17 = vmul.f32 1.442695, %v1786_v5  ;;  %2032 = vrot.lane.b32.xlu1 %v4593_v34, %s3588_s2 }
 0x24d   :  { %1950 = vrot.lane.b32.xlu0 %v4595_v40, %s3589_s19  ;;  %v1657_v38 = vpop.permute.xlu1 %1656  ;;  %v1843_v25 = vpop.permute.xlu0 %1842 }
 0x24e   :  { %3480 = vpow2.f32 %v1908_v32  ;;  %v1693_v51 = vsub.f32 %v4292_v53, %v1657_v38  ;;  %v1882_v50 = vsub.f32 %v4276_v62, %v1843_v25 }
 0x24f   :  { %v4603_v47 = vpop.eup %3468  ;;  %3482 = vpow2.f32 %v1810_v17 }
 0x250   :  { %5241 = vst [vmem:[#allocation14_spill] sm:$0xff] %v4603_v47  ;;  %v4605_v6 = vpop.eup %3470  ;;  %v1720_v19 = vmul.f32 1.442695, %v1693_v51  ;;  %v1906_v5 = vmul.f32 1.442695, %v1882_v50  ;;  %2112 = vrot.lane.b32.xlu1 %v4603_v47, %s3590_s20 }
 0x251   :  { %5242 = vst [vmem:[#allocation15_spill] sm:$0xff] %v4605_v6  ;;  %2030 = vrot.lane.b32.xlu0 %v4605_v6, %s3588_s2  ;;  %v1753_v10 = vpop.permute.xlu1 %1752  ;;  %v1655_v4 = vpop.permute.xlu0 %1654 }
 0x252   :  { %3484 = vpow2.f32 %v1720_v19  ;;  %v1789_v38 = vsub.f32 %v4292_v53, %v1753_v10  ;;  %v1692_v25 = vsub.f32 %v4294_v36, %v1655_v4 }
 0x253   :  { %v4613_v32 = vpop.eup %3472  ;;  %3486 = vpow2.f32 %v1906_v5 }
 0x254   :  { %5243 = vst [vmem:[#allocation16_spill] sm:$0xff] %v4613_v32  ;;  %v4615_v17 = vpop.eup %3474  ;;  %v1816_v51 = vmul.f32 1.442695, %v1789_v38  ;;  %v1718_v50 = vmul.f32 1.442695, %v1692_v25  ;;  %1956 = vrot.lane.b32.xlu1 %v4613_v32, %s3589_s19 }
 0x255   :  { %5244 = vst [vmem:[#allocation17_spill] sm:$0xff] %v4615_v17  ;;  %2110 = vrot.lane.b32.xlu0 %v4615_v17, %s3590_s20  ;;  %v1849_v6 = vpop.permute.xlu1 %1848  ;;  %v1751_v47 = vpop.permute.xlu0 %1750 }
 0x256   :  { %3488 = vpow2.f32 %v1816_v51  ;;  %v1885_v10 = vsub.f32 %v4292_v53, %v1849_v6  ;;  %v1788_v4 = vsub.f32 %v4294_v36, %v1751_v47 }
 0x257   :  { %v4623_v19 = vpop.eup %3476  ;;  %3490 = vpow2.f32 %v1718_v50 }
 0x258   :  { %5245 = vst [vmem:[#allocation18_spill] sm:$0xff] %v4623_v19  ;;  %v4625_v5 = vpop.eup %3478  ;;  %v1912_v38 = vmul.f32 1.442695, %v1885_v10  ;;  %v1814_v25 = vmul.f32 1.442695, %v1788_v4  ;;  %2036 = vrot.lane.b32.xlu1 %v4623_v19, %s3588_s2 }
 0x259   :  { %5246 = vst [vmem:[#allocation19_spill] sm:$0xff] %v4625_v5  ;;  %1954 = vrot.lane.b32.xlu0 %v4625_v5, %s3589_s19  ;;  %v1661_v32 = vpop.permute.xlu1 %1660  ;;  %v1847_v17 = vpop.permute.xlu0 %1846 }
 0x25a   :  { %3492 = vpow2.f32 %v1912_v38  ;;  %v1695_v6 = vsub.f32 %v4310_v41, %v1661_v32  ;;  %v1884_v47 = vsub.f32 %v4294_v36, %v1847_v17 }
 0x25b   :  { %v4633_v51 = vpop.eup %3480  ;;  %3494 = vpow2.f32 %v1814_v25 }
 0x25c   :  { %5247 = vst [vmem:[#allocation20_spill] sm:$0xff] %v4633_v51  ;;  %v4635_v50 = vpop.eup %3482  ;;  %v1724_v10 = vmul.f32 1.442695, %v1695_v6  ;;  %v1910_v4 = vmul.f32 1.442695, %v1884_v47  ;;  %2116 = vrot.lane.b32.xlu1 %v4633_v51, %s3590_s20 }
 0x25d   :  { %5248 = vst [vmem:[#allocation21_spill] sm:$0xff] %v4635_v50  ;;  %2034 = vrot.lane.b32.xlu0 %v4635_v50, %s3588_s2  ;;  %v1757_v19 = vpop.permute.xlu1 %1756  ;;  %v1659_v5 = vpop.permute.xlu0 %1658 }
 0x25e   :  { %3496 = vpow2.f32 %v1724_v10  ;;  %v1791_v32 = vsub.f32 %v4310_v41, %v1757_v19  ;;  %v1694_v17 = vsub.f32 %v4312_v18, %v1659_v5 }
 0x25f   :  { %v4643_v38 = vpop.eup %3484  ;;  %3498 = vpow2.f32 %v1910_v4 }
 0x260   :  { %5249 = vst [vmem:[#allocation22_spill] sm:$0xff] %v4643_v38  ;;  %v4645_v25 = vpop.eup %3486  ;;  %v1820_v6 = vmul.f32 1.442695, %v1791_v32  ;;  %v1722_v47 = vmul.f32 1.442695, %v1694_v17  ;;  %1960 = vrot.lane.b32.xlu1 %v4643_v38, %s3589_s19 }
 0x261   :  { %5250 = vst [vmem:[#allocation23_spill] sm:$0xff] %v4645_v25  ;;  %2114 = vrot.lane.b32.xlu0 %v4645_v25, %s3590_s20  ;;  %v1853_v50 = vpop.permute.xlu1 %1852  ;;  %v1755_v51 = vpop.permute.xlu0 %1754 }
 0x262   :  { %3500 = vpow2.f32 %v1820_v6  ;;  %v1887_v19 = vsub.f32 %v4310_v41, %v1853_v50  ;;  %v1790_v5 = vsub.f32 %v4312_v18, %v1755_v51 }
 0x263   :  { %v4653_v10 = vpop.eup %3488  ;;  %3502 = vpow2.f32 %v1722_v47 }
 0x264   :  { %5251 = vst [vmem:[#allocation24_spill] sm:$0xff] %v4653_v10  ;;  %v4655_v4 = vpop.eup %3490  ;;  %v1916_v32 = vmul.f32 1.442695, %v1887_v19  ;;  %v1818_v17 = vmul.f32 1.442695, %v1790_v5  ;;  %2040 = vrot.lane.b32.xlu1 %v4653_v10, %s3588_s2 }
 0x265   :  { %5252 = vst [vmem:[#allocation25_spill] sm:$0xff] %v4655_v4  ;;  %1958 = vrot.lane.b32.xlu0 %v4655_v4, %s3589_s19  ;;  %v1665_v38 = vpop.permute.xlu1 %1664  ;;  %v1851_v25 = vpop.permute.xlu0 %1850 }
 0x266   :  { %3504 = vpow2.f32 %v1916_v32  ;;  %v1697_v50 = vsub.f32 %v4328_v44, %v1665_v38  ;;  %v1886_v51 = vsub.f32 %v4312_v18, %v1851_v25 }
 0x267   :  { %v4663_v6 = vpop.eup %3492  ;;  %3506 = vpow2.f32 %v1818_v17 }
 0x268   :  { %5253 = vst [vmem:[#allocation26_spill] sm:$0xff] %v4663_v6  ;;  %v4665_v47 = vpop.eup %3494  ;;  %v1728_v19 = vmul.f32 1.442695, %v1697_v50  ;;  %v1914_v5 = vmul.f32 1.442695, %v1886_v51  ;;  %2120 = vrot.lane.b32.xlu1 %v4663_v6, %s3590_s20 }
 0x269   :  { %5254 = vst [vmem:[#allocation27_spill] sm:$0xff] %v4665_v47  ;;  %2038 = vrot.lane.b32.xlu0 %v4665_v47, %s3588_s2  ;;  %v1761_v10 = vpop.permute.xlu1 %1760  ;;  %v1663_v4 = vpop.permute.xlu0 %1662 }
 0x26a   :  { %3508 = vpow2.f32 %v1728_v19  ;;  %v1793_v38 = vsub.f32 %v4328_v44, %v1761_v10  ;;  %v1696_v25 = vsub.f32 %v4330_v26, %v1663_v4 }
 0x26b   :  { %v4673_v32 = vpop.eup %3496  ;;  %3510 = vpow2.f32 %v1914_v5 }
 0x26c   :  { %5255 = vst [vmem:[#allocation28_spill] sm:$0xff] %v4673_v32  ;;  %v4675_v17 = vpop.eup %3498  ;;  %v1824_v50 = vmul.f32 1.442695, %v1793_v38  ;;  %v1726_v51 = vmul.f32 1.442695, %v1696_v25  ;;  %1964 = vrot.lane.b32.xlu1 %v4673_v32, %s3589_s19 }
 0x26d   :  { %5256 = vst [vmem:[#allocation29_spill] sm:$0xff] %v4675_v17  ;;  %2118 = vrot.lane.b32.xlu0 %v4675_v17, %s3590_s20  ;;  %v1857_v47 = vpop.permute.xlu1 %1856  ;;  %v1759_v6 = vpop.permute.xlu0 %1758 }
 0x26e   :  { %3512 = vpow2.f32 %v1824_v50  ;;  %v1889_v10 = vsub.f32 %v4328_v44, %v1857_v47  ;;  %v1792_v4 = vsub.f32 %v4330_v26, %v1759_v6 }
 0x26f   :  { %v4683_v19 = vpop.eup %3500  ;;  %3514 = vpow2.f32 %v1726_v51 }
 0x270   :  { %5257 = vst [vmem:[#allocation30_spill] sm:$0xff] %v4683_v19  ;;  %v4685_v5 = vpop.eup %3502  ;;  %v1920_v38 = vmul.f32 1.442695, %v1889_v10  ;;  %v1822_v25 = vmul.f32 1.442695, %v1792_v4  ;;  %2044 = vrot.lane.b32.xlu1 %v4683_v19, %s3588_s2 }
 0x271   :  { %5258 = vst [vmem:[#allocation31_spill] sm:$0xff] %v4685_v5  ;;  %1962 = vrot.lane.b32.xlu0 %v4685_v5, %s3589_s19  ;;  %v1855_v32 = vpop.permute.xlu0 %1854 }
 0x272   :  { %3516 = vpow2.f32 %v1920_v38  ;;  %v1888_v50 = vsub.f32 %v4330_v26, %v1855_v32 }
 0x273   :  { %v4692_v47 = vpop.eup %3504  ;;  %3518 = vpow2.f32 %v1822_v25 }
 0x274   :  { %5259 = vst [vmem:[#allocation32_spill] sm:$0xff] %v4692_v47  ;;  %v4694_v6 = vpop.eup %3506  ;;  %v1918_v51 = vmul.f32 1.442695, %v1888_v50  ;;  %2124 = vrot.lane.b32.xlu1 %v4692_v47, %s3590_s20 }
 0x275   :  { %5260 = vst [vmem:[#allocation33_spill] sm:$0xff] %v4694_v6  ;;  %2042 = vrot.lane.b32.xlu0 %v4694_v6, %s3588_s2 }
 0x276   :  { %3520 = vpow2.f32 %v1918_v51  ;;  %v1571_v51 = vsub.f32 %v4190_v37, %v4345_v12 }
 0x277   :  { %v4700_v10 = vpop.eup %3508 }
 0x278   :  { %5261 = vst [vmem:[#allocation34_spill] sm:$0xff] %v4700_v10  ;;  %v4702_v4 = vpop.eup %3510  ;;  %1968 = vrot.lane.b32.xlu1 %v4700_v10, %s3589_s19  ;;  %v1588_v47 = vmul.f32 1.442695, %v1571_v51  ;;  %v1572_v51 = vsub.f32 %v4218_v7, %v4370_v24 }
 0x279   :  { %5262 = vst [vmem:[#allocation35_spill] sm:$0xff] %v4702_v4  ;;  %2122 = vrot.lane.b32.xlu0 %v4702_v4, %s3590_s20 }
 0x27a   :  { %3522 = vpow2.f32 %v1588_v47  ;;  %v1590_v47 = vmul.f32 1.442695, %v1572_v51 }
 0x27b   :  { %v4708_v32 = vpop.eup %3512 }
 0x27c   :  { %5263 = vst [vmem:[#allocation36_spill] sm:$0xff] %v4708_v32  ;;  %v4710_v38 = vpop.eup %3514  ;;  %2048 = vrot.lane.b32.xlu1 %v4708_v32, %s3588_s2  ;;  %v1570_v32 = vsub.f32 %v4196_v28, %v4353_v52 }
 0x27d   :  { %5264 = vst [vmem:[#allocation37_spill] sm:$0xff] %v4710_v38  ;;  %1966 = vrot.lane.b32.xlu0 %v4710_v38, %s3589_s19 }
 0x27e   :  { %v1586_v38 = vmul.f32 1.442695, %v1570_v32 }
 0x27f   :  { %v4716_v25 = vpop.eup %3516 }
 0x280   :  { %5265 = vst [vmem:[#allocation38_spill] sm:$0xff] %v4716_v25  ;;  %v4718_v50 = vpop.eup %3518  ;;  %2128 = vrot.lane.b32.xlu1 %v4716_v25, %s3590_s20  ;;  %v1573_v25 = vsub.f32 %v4203_v29, %v4359_v48  ;;  %3524 = vpow2.f32 %v1586_v38  ;;  %v1575_v29 = vsub.f32 %v4230_v0, %v4380_v8 }
 0x281   :  { %5266 = vst [vmem:[#allocation39_spill] sm:$0xff] %v4718_v50  ;;  %2046 = vrot.lane.b32.xlu0 %v4718_v50, %s3588_s2 }
 0x282   :  { %v1592_v37 = vmul.f32 1.442695, %v1573_v25 }
 0x283   :  { %v4726_v10 = vpop.eup %3520 }
 0x284   :  { %5267 = vst [vmem:[#allocation40_spill] sm:$0xff] %v4726_v10  ;;  %3526 = vpow2.f32 %v1592_v37  ;;  %v1596_v37 = vmul.f32 1.442695, %v1575_v29 }
 0x285   :  { %2126 = vrot.lane.b32.xlu0 %v4726_v10, %s3590_s20 }
 0x287   :  { %v3523_v12 = vpop.eup %3522 }
 0x28d   :  { %v3525_v52 = vpop.eup %3524 }
 0x291   :  { %v4738_v7 = vpop.eup %3526 }
 0x292   :  { %v1941_v19 = vpop.permute.xlu1 %1940 }
 0x293   :  { %v1987_v50 = vadd.f32 %v3523_v12, %v1941_v19 }
 0x296   :  { %v2021_v4 = vpop.permute.xlu1 %2020 }
 0x297   :  { %v2067_v6 = vadd.f32 %v2021_v4, %v1987_v50 }
 0x29a   :  { %v2101_v10 = vpop.permute.xlu1 %2100 }
 0x29b   :  { %v2147_v5 = vadd.f32 %v2101_v10, %v2067_v6  ;;  %v1939_v17 = vpop.permute.xlu0 %1938 }
 0x29c   :  { %v1986_v32 = vadd.f32 %v3525_v52, %v1939_v17 }
 0x29d   :  { %3528 = vrcp.f32 %v2147_v5  ;;  %v1574_v5 = vsub.f32 %v4232_v21, %v4386_v61 }
 0x29e   :  { %v1945_v28 = vpop.permute.xlu1 %1944  ;;  %3530 = vpow2.f32 %v1590_v47 }
 0x29f   :  { %v2019_v48 = vpop.permute.xlu0 %2018  ;;  %v1989_v19 = vadd.f32 %v4738_v7, %v1945_v28  ;;  %v1594_v17 = vmul.f32 1.442695, %v1574_v5  ;;  %v1577_v28 = vsub.f32 %v4252_v31, %v4398_v54  ;;  %v1576_v31 = vsub.f32 %v4254_v39, %v4404_v23 }
 0x2a0   :  { %v2066_v38 = vadd.f32 %v2019_v48, %v1986_v32  ;;  %v1579_v39 = vsub.f32 %v4274_v13, %v4416_v49 }
 0x2a2   :  { %v2025_v25 = vpop.permute.xlu1 %2024 }
 0x2a3   :  { %v2099_v60 = vpop.permute.xlu0 %2098  ;;  %v2069_v10 = vadd.f32 %v2025_v25, %v1989_v19  ;;  %v1600_v25 = vmul.f32 1.442695, %v1577_v28 }
 0x2a4   :  { %v2146_v24 = vadd.f32 %v2099_v60, %v2066_v38 }
 0x2a6   :  { %3532 = vrcp.f32 %v2146_v24  ;;  %v2105_v6 = vpop.permute.xlu1 %2104 }
 0x2a7   :  { %3534 = vpow2.f32 %v1596_v37  ;;  %v1943_v4 = vpop.permute.xlu0 %1942  ;;  %v2149_v0 = vadd.f32 %v2105_v6, %v2069_v10 }
 0x2a9   :  { %3536 = vrcp.f32 %v2149_v0 }
 0x2aa   :  { %v3529_v8 = vpop.eup %3528  ;;  %3538 = vpow2.f32 %v1594_v17 }
 0x2ab   :  { %v2023_v50 = vpop.permute.xlu0 %2022  ;;  %2492 = vrot.lane.b32.xlu1 %v3529_v8, %s3592_s22  ;;  %2312 = vrot.lane.b32.xlu0 %v3529_v8, %s3591_s21  ;;  %v3531_v51 = vpop.eup %3530  ;;  %v2179_v48 = vmul.f32 %v3529_v8, %v3523_v12 }
 0x2ac   :  { %v1988_v60 = vadd.f32 %v3531_v51, %v1943_v4 }
 0x2ae   :  { %v1949_v47 = vpop.permute.xlu1 %1948  ;;  %v2068_v29 = vadd.f32 %v2023_v50, %v1988_v60 }
 0x2af   :  { %v2103_v21 = vpop.permute.xlu0 %2102  ;;  %2672 = vrot.lane.b32.xlu1 %v3529_v8, %s3593_s23  ;;  %v1598_v8 = vmul.f32 1.442695, %v1576_v31 }
 0x2b0   :  { %v2148_v61 = vadd.f32 %v2103_v21, %v2068_v29 }
 0x2b2   :  { %v2029_v32 = vpop.permute.xlu1 %2028  ;;  %3540 = vrcp.f32 %v2148_v61 }
 0x2b3   :  { %v3533_v38 = vpop.eup %3532  ;;  %v1947_v37 = vpop.permute.xlu0 %1946  ;;  %2201 = vperm.xlu1 %3379, %v2179_v48   ;;  %3542 = vpow2.f32 %v1600_v25  ;;  %v1604_v48 = vmul.f32 1.442695, %v1579_v39 }
 0x2b4   :  { %v4748_v24 = vpop.eup %3534  ;;  %2490 = vrot.lane.b32.xlu0 %v3533_v38, %s3592_s22  ;;  %v2178_v0 = vmul.f32 %v3533_v38, %v3525_v52 }
 0x2b5   :  { %v1991_v19 = vadd.f32 %v4748_v24, %v1949_v47 }
 0x2b6   :  { %v2109_v6 = vpop.permute.xlu1 %2108  ;;  %v3537_v10 = vpop.eup %3536 }
 0x2b7   :  { %v2071_v54 = vadd.f32 %v2029_v32, %v1991_v19  ;;  %v2027_v5 = vpop.permute.xlu0 %2026  ;;  %2310 = vrot.lane.b32.xlu1 %v3533_v38, %s3591_s21  ;;  %v3539_v50 = vpop.eup %3538  ;;  %v2181_v61 = vmul.f32 %v3537_v10, %v4738_v7 }
 0x2b8   :  { %2670 = vrot.lane.b32.xlu0 %v3533_v38, %s3593_s23  ;;  %v1990_v60 = vadd.f32 %v3539_v50, %v1947_v37  ;;  %v1578_v37 = vsub.f32 %v4276_v62, %v4422_v15  ;;  %v1581_v62 = vsub.f32 %v4292_v53, %v4434_v46 }
 0x2b9   :  { %v2151_v12 = vadd.f32 %v2109_v6, %v2071_v54 }
 0x2ba   :  { %v1953_v4 = vpop.permute.xlu1 %1952  ;;  %v2070_v23 = vadd.f32 %v2027_v5, %v1990_v60  ;;  %v1602_v5 = vmul.f32 1.442695, %v1578_v37 }
 0x2bb   :  { %v2107_v17 = vpop.permute.xlu0 %2106  ;;  %2496 = vrot.lane.b32.xlu1 %v3537_v10, %s3592_s22  ;;  %3544 = vrcp.f32 %v2151_v12 }
 0x2bc   :  { %2196 = vperm.xlu0 %3380, %v2178_v0   ;;  %3546 = vpow2.f32 %v1598_v8  ;;  %v2150_v52 = vadd.f32 %v2107_v17, %v2070_v23 }
 0x2be   :  { %v2033_v47 = vpop.permute.xlu1 %2032  ;;  %3548 = vrcp.f32 %v2150_v52 }
 0x2bf   :  { %v1951_v28 = vpop.permute.xlu0 %1950  ;;  %2676 = vrot.lane.b32.xlu1 %v3537_v10, %s3593_s23  ;;  %v3541_v29 = vpop.eup %3540  ;;  %3550 = vpow2.f32 %v1604_v48 }
 0x2c0   :  { %2316 = vrot.lane.b32.xlu0 %v3537_v10, %s3591_s21  ;;  %v4763_v38 = vpop.eup %3542  ;;  %v2180_v49 = vmul.f32 %v3541_v29, %v3531_v51 }
 0x2c1   :  { %v1993_v13 = vadd.f32 %v4763_v38, %v1953_v4 }
 0x2c2   :  { %v2113_v21 = vpop.permute.xlu1 %2112 }
 0x2c3   :  { %v2031_v32 = vpop.permute.xlu0 %2030  ;;  %2314 = vrot.lane.b32.xlu1 %v3541_v29, %s3591_s21  ;;  %v2073_v19 = vadd.f32 %v2033_v47, %v1993_v13  ;;  %v1608_v47 = vmul.f32 1.442695, %v1581_v62 }
 0x2c4   :  { %2211 = vperm.xlu0 %3380, %v2181_v61  }
 0x2c5   :  { %v2153_v7 = vadd.f32 %v2113_v21, %v2073_v19 }
 0x2c6   :  { %v1957_v25 = vpop.permute.xlu1 %1956 }
 0x2c7   :  { %v2111_v6 = vpop.permute.xlu0 %2110  ;;  %2206 = vperm.xlu1 %3379, %v2180_v49   ;;  %3552 = vrcp.f32 %v2153_v7 }
 0x2c8   :  { %2494 = vrot.lane.b32.xlu0 %v3541_v29, %s3592_s22  ;;  %v3545_v31 = vpop.eup %3544  ;;  %3554 = vpow2.f32 %v1602_v5 }
 0x2c9   :  { %v3547_v12 = vpop.eup %3546  ;;  %v2183_v60 = vmul.f32 %v3545_v31, %v4748_v24 }
 0x2ca   :  { %v2037_v54 = vpop.permute.xlu1 %2036  ;;  %v1992_v51 = vadd.f32 %v3547_v12, %v1951_v28  ;;  %v1580_v28 = vsub.f32 %v4294_v36, %v4440_v63  ;;  %v1583_v36 = vsub.f32 %v4310_v41, %v4452_v11  ;;  %v1582_v11 = vsub.f32 %v4312_v18, %v4458_v42 }
 0x2cb   :  { %2500 = vrot.lane.b32.xlu1 %v3545_v31, %s3592_s22  ;;  %v1955_v10 = vpop.permute.xlu0 %1954  ;;  %v3549_v8 = vpop.eup %3548  ;;  %v1585_v18 = vsub.f32 %v4328_v44, %v4470_v35  ;;  %v1584_v35 = vsub.f32 %v4330_v26, %v4476_v2 }
 0x2cc   :  { %2674 = vrot.lane.b32.xlu0 %v3541_v29, %s3593_s23  ;;  %v2072_v15 = vadd.f32 %v2031_v32, %v1992_v51  ;;  %v4777_v39 = vpop.eup %3550  ;;  %v2182_v53 = vmul.f32 %v3549_v8, %v3539_v50  ;;  %v1606_v61 = vmul.f32 1.442695, %v1580_v28 }
 0x2cd   :  { %v1995_v23 = vadd.f32 %v4777_v39, %v1957_v25 }
 0x2ce   :  { %v2117_v4 = vpop.permute.xlu1 %2116  ;;  %v2152_v0 = vadd.f32 %v2111_v6, %v2072_v15  ;;  %v1612_v6 = vmul.f32 1.442695, %v1583_v36  ;;  %v1610_v15 = vmul.f32 1.442695, %v1582_v11 }
 0x2cf   :  { %2680 = vrot.lane.b32.xlu1 %v3545_v31, %s3593_s23  ;;  %v2035_v17 = vpop.permute.xlu0 %2034  ;;  %v2075_v52 = vadd.f32 %v2037_v54, %v1995_v23  ;;  %v1616_v23 = vmul.f32 1.442695, %v1585_v18 }
 0x2d0   :  { %2320 = vrot.lane.b32.xlu0 %v3545_v31, %s3591_s21  ;;  %3556 = vrcp.f32 %v2152_v0 }
 0x2d1   :  { %3558 = vpow2.f32 %v1608_v47  ;;  %v2155_v24 = vadd.f32 %v2117_v4, %v2075_v52 }
 0x2d2   :  { %v1961_v46 = vpop.permute.xlu1 %1960 }
 0x2d3   :  { %2318 = vrot.lane.b32.xlu1 %v3549_v8, %s3591_s21  ;;  %v2115_v29 = vpop.permute.xlu0 %2114  ;;  %3560 = vrcp.f32 %v2155_v24 }
 0x2d4   :  { %2221 = vperm.xlu0 %3380, %v2183_v60   ;;  %v3553_v21 = vpop.eup %3552  ;;  %3562 = vpow2.f32 %v1606_v61  ;;  %v1614_v61 = vmul.f32 1.442695, %v1584_v35 }
 0x2d5   :  { %v3555_v48 = vpop.eup %3554  ;;  %v2185_v19 = vmul.f32 %v3553_v21, %v4763_v38 }
 0x2d6   :  { %v2041_v32 = vpop.permute.xlu1 %2040  ;;  %v1994_v50 = vadd.f32 %v3555_v48, %v1955_v10 }
 0x2d7   :  { %2216 = vperm.xlu1 %3379, %v2182_v53   ;;  %v1959_v13 = vpop.permute.xlu0 %1958 }
 0x2d8   :  { %2498 = vrot.lane.b32.xlu0 %v3549_v8, %s3592_s22  ;;  %v2074_v63 = vadd.f32 %v2035_v17, %v1994_v50 }
 0x2da   :  { %v2154_v49 = vadd.f32 %v2115_v29, %v2074_v63  ;;  %v2121_v37 = vpop.permute.xlu1 %2120 }
 0x2db   :  { %2504 = vrot.lane.b32.xlu1 %v3553_v21, %s3592_s22  ;;  %v2039_v31 = vpop.permute.xlu0 %2038 }
 0x2dc   :  { %2678 = vrot.lane.b32.xlu0 %v3549_v8, %s3593_s23  ;;  %3564 = vrcp.f32 %v2154_v49 }
 0x2dd   :  { %v3557_v25 = vpop.eup %3556  ;;  %3566 = vpow2.f32 %v1612_v6 }
 0x2de   :  { %v4791_v7 = vpop.eup %3558  ;;  %v2184_v41 = vmul.f32 %v3557_v25, %v3547_v12  ;;  %v1965_v10 = vpop.permute.xlu1 %1964 }
 0x2df   :  { %2684 = vrot.lane.b32.xlu1 %v3553_v21, %s3593_s23  ;;  %v1997_v54 = vadd.f32 %v4791_v7, %v1961_v46  ;;  %v2119_v62 = vpop.permute.xlu0 %2118 }
 0x2e0   :  { %2324 = vrot.lane.b32.xlu0 %v3553_v21, %s3591_s21  ;;  %v3561_v51 = vpop.eup %3560 }
 0x2e1   :  { %v2077_v5 = vadd.f32 %v2041_v32, %v1997_v54  ;;  %v3563_v4 = vpop.eup %3562  ;;  %v2187_v47 = vmul.f32 %v3561_v51, %v4777_v39 }
 0x2e2   :  { %v1996_v0 = vadd.f32 %v3563_v4, %v1959_v13  ;;  %v2045_v12 = vpop.permute.xlu1 %2044 }
 0x2e3   :  { %2322 = vrot.lane.b32.xlu1 %v3557_v25, %s3591_s21  ;;  %v2157_v38 = vadd.f32 %v2121_v37, %v2077_v5  ;;  %v1963_v8 = vpop.permute.xlu0 %1962 }
 0x2e4   :  { %2231 = vperm.xlu0 %3380, %v2185_v19   ;;  %v2076_v42 = vadd.f32 %v2039_v31, %v1996_v0 }
 0x2e5   :  { %3568 = vrcp.f32 %v2157_v38 }
 0x2e6   :  { %3570 = vpow2.f32 %v1610_v15  ;;  %v2156_v17 = vadd.f32 %v2119_v62, %v2076_v42  ;;  %v2125_v46 = vpop.permute.xlu1 %2124 }
 0x2e7   :  { %2226 = vperm.xlu1 %3379, %v2184_v41   ;;  %v2043_v44 = vpop.permute.xlu0 %2042 }
 0x2e8   :  { %2502 = vrot.lane.b32.xlu0 %v3557_v25, %s3592_s22  ;;  %3572 = vrcp.f32 %v2156_v17 }
 0x2e9   :  { %v3565_v60 = vpop.eup %3564  ;;  %3574 = vpow2.f32 %v1616_v23 }
 0x2ea   :  { %v3567_v53 = vpop.eup %3566  ;;  %v2186_v52 = vmul.f32 %v3565_v60, %v3555_v48  ;;  %v1969_v21 = vpop.permute.xlu1 %1968 }
 0x2eb   :  { %2508 = vrot.lane.b32.xlu1 %v3561_v51, %s3592_s22  ;;  %v1999_v28 = vadd.f32 %v3567_v53, %v1965_v10  ;;  %v2123_v50 = vpop.permute.xlu0 %2122 }
 0x2ec   :  { %2682 = vrot.lane.b32.xlu0 %v3557_v25, %s3593_s23 }
 0x2ed   :  { %v2079_v29 = vadd.f32 %v2045_v12, %v1999_v28 }
 0x2ee   :  { %v2049_v26 = vpop.permute.xlu1 %2048 }
 0x2ef   :  { %2688 = vrot.lane.b32.xlu1 %v3561_v51, %s3593_s23  ;;  %v2159_v24 = vadd.f32 %v2125_v46, %v2079_v29  ;;  %v1967_v63 = vpop.permute.xlu0 %1966 }
 0x2f0   :  { %2328 = vrot.lane.b32.xlu0 %v3561_v51, %s3591_s21 }
 0x2f1   :  { %3576 = vrcp.f32 %v2159_v24  ;;  %v3597_v24 = vmov 3  }
 0x2f2   :  { %v3569_v39 = vpop.eup %3568  ;;  %3578 = vpow2.f32 %v1614_v61  ;;  %v2129_v6 = vpop.permute.xlu1 %2128 }
 0x2f3   :  { %2326 = vrot.lane.b32.xlu1 %v3565_v60, %s3591_s21  ;;  %v3571_v32 = vpop.eup %3570  ;;  %v2189_v49 = vmul.f32 %v3569_v39, %v4791_v7  ;;  %v2047_v54 = vpop.permute.xlu0 %2046 }
 0x2f4   :  { %2241 = vperm.xlu0 %3380, %v2187_v47   ;;  %v1998_v48 = vadd.f32 %v3571_v32, %v1963_v8 }
 0x2f5   :  { %v3573_v36 = vpop.eup %3572 }
 0x2f6   :  { %v2078_v13 = vadd.f32 %v2043_v44, %v1998_v48  ;;  %v3575_v25 = vpop.eup %3574  ;;  %v2188_v19 = vmul.f32 %v3573_v36, %v3563_v4 }
 0x2f7   :  { %2236 = vperm.xlu1 %3379, %v2186_v52   ;;  %v2001_v37 = vadd.f32 %v3575_v25, %v1969_v21  ;;  %v2127_v10 = vpop.permute.xlu0 %2126 }
 0x2f8   :  { %2506 = vrot.lane.b32.xlu0 %v3565_v60, %s3592_s22  ;;  %v2158_v2 = vadd.f32 %v2123_v50, %v2078_v13 }
 0x2f9   :  { %v2081_v31 = vadd.f32 %v2049_v26, %v2001_v37 }
 0x2fa   :  { %3580 = vrcp.f32 %v2158_v2 }
 0x2fb   :  { %2512 = vrot.lane.b32.xlu1 %v3569_v39, %s3592_s22  ;;  %v2161_v41 = vadd.f32 %v2129_v6, %v2081_v31 }
 0x2fc   :  { %2686 = vrot.lane.b32.xlu0 %v3565_v60, %s3593_s23  ;;  %v3595_v60 = vmov 1  }
 0x2fd   :  { %3582 = vrcp.f32 %v2161_v41 }
 0x2fe   :  { %v3577_v11 = vpop.eup %3576 }
 0x2ff   :  { %2692 = vrot.lane.b32.xlu1 %v3569_v39, %s3593_s23  ;;  %v3579_v5 = vpop.eup %3578  ;;  %v2191_v15 = vmul.f32 %v3577_v11, %v3567_v53  ;;  %v3596_v53 = vmov 2  }
 0x300   :  { %2332 = vrot.lane.b32.xlu0 %v3569_v39, %s3591_s21  ;;  %v2000_v7 = vadd.f32 %v3579_v5, %v1967_v63 }
 0x302   :  { %v2080_v38 = vadd.f32 %v2047_v54, %v2000_v7  ;;  %v5268_v7 = vld [vmem:[#allocation13_spill] sm:$0xff] }
 0x303   :  { %2330 = vrot.lane.b32.xlu1 %v3573_v36, %s3591_s21 }
 0x304   :  { %2251 = vperm.xlu0 %3380, %v2189_v49   ;;  %v2160_v51 = vadd.f32 %v2127_v10, %v2080_v38 }
 0x306   :  { %3584 = vrcp.f32 %v2160_v51  ;;  %v5269_v51 = vld [vmem:[#allocation12_spill] sm:$0xff] }
 0x307   :  { %2246 = vperm.xlu1 %3379, %v2188_v19   ;;  %v3581_v62 = vpop.eup %3580 }
 0x308   :  { %2510 = vrot.lane.b32.xlu0 %v3573_v36, %s3592_s22  ;;  %v2190_v4 = vmul.f32 %v3581_v62, %v3571_v32 }
 0x30a   :  { %v3583_v0 = vpop.eup %3582 }
 0x30b   :  { %2516 = vrot.lane.b32.xlu1 %v3577_v11, %s3592_s22  ;;  %v2193_v18 = vmul.f32 %v3583_v0, %v3575_v25 }
 0x30c   :  { %2690 = vrot.lane.b32.xlu0 %v3573_v36, %s3593_s23 }
 0x30f   :  { %2696 = vrot.lane.b32.xlu1 %v3577_v11, %s3593_s23 }
 0x310   :  { %2336 = vrot.lane.b32.xlu0 %v3577_v11, %s3591_s21 }
 0x313   :  { %2334 = vrot.lane.b32.xlu1 %v3581_v62, %s3591_s21  ;;  %v3585_v12 = vpop.eup %3584 }
 0x314   :  { %2261 = vperm.xlu0 %3380, %v2191_v15   ;;  %v2192_v8 = vmul.f32 %v3585_v12, %v3579_v5 }
 0x317   :  { %2256 = vperm.xlu1 %3379, %v2190_v4  }
 0x318   :  { %2514 = vrot.lane.b32.xlu0 %v3581_v62, %s3592_s22 }
 0x31b   :  { %2520 = vrot.lane.b32.xlu1 %v3583_v0, %s3592_s22 }
 0x31c   :  { %2694 = vrot.lane.b32.xlu0 %v3581_v62, %s3593_s23 }
 0x31d   :  { %v2493_v42 = vpop.permute.xlu1 %2492  ;;  %v2313_v17 = vpop.permute.xlu0 %2312 }
 0x31e   :  { %v2539_v47 = vmul.f32 %v4502_v58, %v2493_v42  ;;  %v2359_v28 = vmul.f32 %v4496_v27, %v2313_v17 }
 0x31f   :  { %2700 = vrot.lane.b32.xlu1 %v3583_v0, %s3593_s23 }
 0x320   :  { %2340 = vrot.lane.b32.xlu0 %v3583_v0, %s3591_s21 }
 0x321   :  { %v2673_v23 = vpop.permute.xlu1 %2672 }
 0x322   :  { %v2719_v35 = vmul.f32 %v4507_v14, %v2673_v23 }
 0x323   :  { %2338 = vrot.lane.b32.xlu1 %v3585_v12, %s3591_s21 }
 0x324   :  { %2271 = vperm.xlu0 %3380, %v2193_v18  }
 0x326   :  { %v2491_v46 = vpop.permute.xlu0 %2490 }
 0x327   :  { %2266 = vperm.xlu1 %3379, %v2192_v8   ;;  %v2538_v27 = vmul.f32 %v4519_v9, %v2491_v46  ;;  %v5272_v8 = vld [vmem:[#allocation20_spill] sm:$0xff]  ;;  %v5273_v46 = vld [vmem:[#allocation15_spill] sm:$0xff] }
 0x328   :  { %2518 = vrot.lane.b32.xlu0 %v3585_v12, %s3592_s22 }
 0x329   :  { %3381 = vset.pattern.permute.xlu0 %v3595_v60 }
 0x32a   :  { %v2671_v29 = vpop.permute.xlu0 %2670 }
 0x32b   :  { %3382 = vset.pattern.permute.xlu1 %v3596_v53  ;;  %v2718_v61 = vmul.f32 %v4529_v57, %v2671_v29 }
 0x32c   :  { %2698 = vrot.lane.b32.xlu0 %v3585_v12, %s3593_s23  ;;  %2561 = vperm.xlu1 %3382, %v2539_v47   ;;  %v5271_v12 = vld [vmem:[#allocation14_spill] sm:$0xff] }
 0x32e   :  { %v4832_v52 = vpop.permute.xlu1 %2201 }
 0x330   :  { %2381 = vperm.xlu0 %3381, %v2359_v28   ;;  %3384 = vset.pattern.permute.xlu1 %v3595_v60 }
 0x332   :  { %v2311_v44 = vpop.permute.xlu1 %2310 }
 0x333   :  { %v2358_v58 = vmul.f32 %v4509_v55, %v2311_v44  ;;  %v5274_v44 = vld [vmem:[#allocation19_spill] sm:$0xff] }
 0x334   :  { %3383 = vset.pattern.permute.xlu0 %v3597_v24 }
 0x335   :  { %2741 = vperm.xlu0 %3383, %v2719_v35   ;;  %2376 = vperm.xlu1 %3384, %v2358_v58  }
 0x336   :  { %v2497_v39 = vpop.permute.xlu1 %2496 }
 0x337   :  { %v4838_v21 = vpop.permute.xlu0 %2196  ;;  %v2541_v32 = vmul.f32 %v4527_v16, %v2497_v39 }
 0x339   :  { %3385 = vset.pattern.permute.xlu0 %v3596_v53  ;;  %3386 = vset.pattern.permute.xlu1 %v3597_v24 }
 0x33a   :  { %2556 = vperm.xlu0 %3385, %v2538_v27   ;;  %v2677_v14 = vpop.permute.xlu1 %2676  ;;  %2736 = vperm.xlu1 %3386, %v2718_v61   ;;  %v5275_v27 = vld [vmem:[#allocation16_spill] sm:$0xff] }
 0x33b   :  { %v2317_v55 = vpop.permute.xlu0 %2316  ;;  %v2721_v9 = vmul.f32 %v4537_v1, %v2677_v14  ;;  %v5276_v14 = vld [vmem:[#allocation21_spill] sm:$0xff] }
 0x33c   :  { %v2361_v50 = vmul.f32 %v4517_v30, %v2317_v55 }
 0x33e   :  { %2571 = vperm.xlu0 %3385, %v2541_v32   ;;  %v2315_v48 = vpop.permute.xlu1 %2314  ;;  %3387 = vset.pattern.permute.xlu1 %v3595_v60 }
 0x33f   :  { %v4847_v13 = vpop.permute.xlu0 %2211  ;;  %2391 = vperm.xlu1 %3387, %v2361_v50   ;;  %v2360_v16 = vmul.f32 %v4539_v59, %v2315_v48  ;;  %v5277_v48 = vld [vmem:[#allocation18_spill] sm:$0xff] }
 0x342   :  { %v4850_v57 = vpop.permute.xlu1 %2206 }
 0x343   :  { %v2495_v26 = vpop.permute.xlu0 %2494  ;;  %3388 = vset.pattern.permute.xlu1 %v3597_v24 }
 0x344   :  { %2751 = vperm.xlu1 %3388, %v2721_v9   ;;  %v2540_v25 = vmul.f32 %v4547_v3, %v2495_v26 }
 0x346   :  { %v2501_v2 = vpop.permute.xlu1 %2500 }
 0x347   :  { %v2543_v30 = vmul.f32 %v4563_v33, %v2501_v2  ;;  %v2675_v36 = vpop.permute.xlu0 %2674 }
 0x348   :  { %3389 = vset.pattern.permute.xlu1 %v3595_v60  ;;  %v2720_v33 = vmul.f32 %v4555_v22, %v2675_v36 }
 0x349   :  { %2581 = vperm.xlu0 %3385, %v2543_v30   ;;  %2386 = vperm.xlu1 %3389, %v2360_v16   ;;  %v5278_v16 = vld [vmem:[#allocation23_spill] sm:$0xff] }
 0x34a   :  { %v2681_v63 = vpop.permute.xlu1 %2680 }
 0x34b   :  { %v2723_v49 = vmul.f32 %v4573_v20, %v2681_v63  ;;  %v2321_v1 = vpop.permute.xlu0 %2320  ;;  %v5279_v63 = vld [vmem:[#allocation25_spill] sm:$0xff] }
 0x34c   :  { %v2363_v20 = vmul.f32 %v4553_v45, %v2321_v1 }
 0x34d   :  { %3393 = vset.pattern.permute.xlu0 %v3597_v24  ;;  %3390 = vset.pattern.permute.xlu1 %v3596_v53 }
 0x34e   :  { %v2319_v37 = vpop.permute.xlu1 %2318  ;;  %2761 = vperm.xlu0 %3393, %v2723_v49   ;;  %2566 = vperm.xlu1 %3390, %v2540_v25  }
 0x34f   :  { %v4860_v59 = vpop.permute.xlu0 %2221  ;;  %v2362_v19 = vmul.f32 %v4565_v56, %v2319_v37  ;;  %v5280_v37 = vld [vmem:[#allocation22_spill] sm:$0xff] }
 0x352   :  { %v4864_v6 = vpop.permute.xlu1 %2216  ;;  %3394 = vset.pattern.permute.xlu0 %v3595_v60  ;;  %3391 = vset.pattern.permute.xlu1 %v3597_v24 }
 0x353   :  { %v2499_v3 = vpop.permute.xlu0 %2498  ;;  %2396 = vperm.xlu0 %3394, %v2362_v19   ;;  %2746 = vperm.xlu1 %3391, %v2720_v33  }
 0x354   :  { %v2542_v56 = vmul.f32 %v4575_v43, %v2499_v3 }
 0x356   :  { %v2505_v31 = vpop.permute.xlu1 %2504 }
 0x357   :  { %v2545_v54 = vmul.f32 %v4593_v34, %v2505_v31  ;;  %v2679_v41 = vpop.permute.xlu0 %2678  ;;  %3392 = vset.pattern.permute.xlu1 %v3595_v60  ;;  %3398 = vset.pattern.permute.xlu0 %v3596_v53  ;;  %v5281_v31 = vld [vmem:[#allocation24_spill] sm:$0xff] }
 0x358   :  { %2401 = vperm.xlu1 %3392, %v2363_v20   ;;  %v2722_v10 = vmul.f32 %v5268_v7, %v2679_v41  ;;  %v5282_v41 = vld [vmem:[#allocation29_spill] sm:$0xff] }
 0x359   :  { %2591 = vperm.xlu0 %3398, %v2545_v54  }
 0x35a   :  { %v2685_v22 = vpop.permute.xlu1 %2684 }
 0x35b   :  { %v2325_v11 = vpop.permute.xlu0 %2324  ;;  %v2725_v18 = vmul.f32 %v5271_v12, %v2685_v22 }
 0x35c   :  { %3395 = vset.pattern.permute.xlu1 %v3596_v53  ;;  %v2365_v62 = vmul.f32 %v5269_v51, %v2325_v11 }
 0x35d   :  { %2576 = vperm.xlu1 %3395, %v2542_v56   ;;  %3400 = vset.pattern.permute.xlu0 %v3595_v60 }
 0x35e   :  { %v2323_v45 = vpop.permute.xlu1 %2322 }
 0x35f   :  { %v2364_v5 = vmul.f32 %v4595_v40, %v2323_v45  ;;  %v4876_v34 = vpop.permute.xlu0 %2231  ;;  %v5270_v40 = vld [vmem:[#allocation17_spill] sm:$0xff]  ;;  %v5283_v45 = vld [vmem:[#allocation26_spill] sm:$0xff] }
 0x361   :  { %2406 = vperm.xlu0 %3400, %v2364_v5   ;;  %3396 = vset.pattern.permute.xlu1 %v3597_v24 }
 0x362   :  { %v4880_v38 = vpop.permute.xlu1 %2226  ;;  %2756 = vperm.xlu1 %3396, %v2722_v10   ;;  %v5284_v10 = vld [vmem:[#allocation31_spill] sm:$0xff] }
 0x363   :  { %v2503_v43 = vpop.permute.xlu0 %2502 }
 0x364   :  { %v2544_v28 = vmul.f32 %v5273_v46, %v2503_v43 }
 0x365   :  { %3402 = vset.pattern.permute.xlu0 %v3597_v24 }
 0x366   :  { %v2509_v15 = vpop.permute.xlu1 %2508  ;;  %3397 = vset.pattern.permute.xlu1 %v3595_v60 }
 0x367   :  { %v2683_v4 = vpop.permute.xlu0 %2682  ;;  %2411 = vperm.xlu1 %3397, %v2365_v62   ;;  %v2547_v9 = vmul.f32 %v5277_v48, %v2509_v15  ;;  %v5285_v62 = vld [vmem:[#allocation27_spill] sm:$0xff]  ;;  %v5292_v48 = vld [vmem:[#allocation34_spill] sm:$0xff] }
 0x368   :  { %v2724_v0 = vmul.f32 %v5270_v40, %v2683_v4 }
 0x36a   :  { %2766 = vperm.xlu0 %3402, %v2724_v0   ;;  %v2689_v42 = vpop.permute.xlu1 %2688  ;;  %v5286_v0 = vld [vmem:[#allocation33_spill] sm:$0xff] }
 0x36b   :  { %v2727_v17 = vmul.f32 %v5272_v8, %v2689_v42  ;;  %v2329_v47 = vpop.permute.xlu0 %2328  ;;  %3399 = vset.pattern.permute.xlu1 %v3597_v24  ;;  %v5287_v42 = vld [vmem:[#allocation28_spill] sm:$0xff] }
 0x36c   :  { %2771 = vperm.xlu1 %3399, %v2725_v18   ;;  %v2367_v61 = vmul.f32 %v5275_v27, %v2329_v47  ;;  %v5288_v47 = vld [vmem:[#allocation35_spill] sm:$0xff]  ;;  %v5290_v27 = vld [vmem:[#allocation37_spill] sm:$0xff] }
 0x36e   :  { %2781 = vperm.xlu0 %3402, %v2727_v17   ;;  %v2327_v23 = vpop.permute.xlu1 %2326 }
 0x36f   :  { %v2366_v35 = vmul.f32 %v5274_v44, %v2327_v23  ;;  %v4891_v29 = vpop.permute.xlu0 %2241  ;;  %v5289_v44 = vld [vmem:[#allocation30_spill] sm:$0xff] }
 0x370   :  { %3401 = vset.pattern.permute.xlu1 %v3596_v53 }
 0x371   :  { %2586 = vperm.xlu1 %3401, %v2544_v28  }
 0x372   :  { %3405 = vset.pattern.permute.xlu0 %v3595_v60  ;;  %v4895_v58 = vpop.permute.xlu1 %2236 }
 0x373   :  { %2416 = vperm.xlu0 %3405, %v2366_v35   ;;  %v2507_v39 = vpop.permute.xlu0 %2506 }
 0x374   :  { %v2546_v55 = vmul.f32 %v5276_v14, %v2507_v39 }
 0x375   :  { %3403 = vset.pattern.permute.xlu1 %v3595_v60 }
 0x376   :  { %v2513_v32 = vpop.permute.xlu1 %2512  ;;  %2421 = vperm.xlu1 %3403, %v2367_v61  }
 0x377   :  { %3406 = vset.pattern.permute.xlu0 %v3596_v53  ;;  %v2687_v50 = vpop.permute.xlu0 %2686  ;;  %v2549_v54 = vmul.f32 %v5281_v31, %v2513_v32 }
 0x378   :  { %2596 = vperm.xlu0 %3406, %v2546_v55   ;;  %v2726_v30 = vmul.f32 %v5278_v16, %v2687_v50  ;;  %v5291_v55 = vld [vmem:[#allocation32_spill] sm:$0xff] }
 0x379   :  { %v5293_v16 = vld [vmem:[#allocation40_spill] sm:$0xff] }
 0x37a   :  { %v2693_v26 = vpop.permute.xlu1 %2692  ;;  %3404 = vset.pattern.permute.xlu1 %v3596_v53 }
 0x37b   :  { %v2333_v2 = vpop.permute.xlu0 %2332  ;;  %2601 = vperm.xlu1 %3404, %v2547_v9   ;;  %v2729_v5 = vmul.f32 %v5283_v45, %v2693_v26 }
 0x37c   :  { %3411 = vset.pattern.permute.xlu0 %v3595_v60  ;;  %v2369_v33 = vmul.f32 %v5280_v37, %v2333_v2 }
 0x37e   :  { %v2331_v36 = vpop.permute.xlu1 %2330 }
 0x37f   :  { %v2368_v49 = vmul.f32 %v5279_v63, %v2331_v36  ;;  %v4906_v1 = vpop.permute.xlu0 %2251  ;;  %3407 = vset.pattern.permute.xlu1 %v3597_v24  ;;  %v5294_v36 = vld [vmem:[#allocation36_spill] sm:$0xff] }
 0x380   :  { %2776 = vperm.xlu1 %3407, %v2726_v30  }
 0x381   :  { %2426 = vperm.xlu0 %3411, %v2368_v49  }
 0x382   :  { %v4909_v25 = vpop.permute.xlu1 %2246 }
 0x383   :  { %v2511_v19 = vpop.permute.xlu0 %2510 }
 0x384   :  { %3408 = vset.pattern.permute.xlu1 %v3595_v60  ;;  %v2548_v15 = vmul.f32 %v5285_v62, %v2511_v19 }
 0x385   :  { %2431 = vperm.xlu1 %3408, %v2369_v33   ;;  %3413 = vset.pattern.permute.xlu0 %v3597_v24  ;;  %v5295_v33 = vld [vmem:[#allocation39_spill] sm:$0xff] }
 0x386   :  { %v2517_v3 = vpop.permute.xlu1 %2516 }
 0x387   :  { %v2691_v20 = vpop.permute.xlu0 %2690  ;;  %v2551_v35 = vmul.f32 %v5289_v44, %v2517_v3  ;;  %v5296_v3 = vld [vmem:[#allocation2_spill] sm:$0xff] }
 0x388   :  { %v2728_v22 = vmul.f32 %v5282_v41, %v2691_v20  ;;  %v2456_v20 = vsub.s32 1, %v5296_v3  ;;  %v1361_v41 = vld [vmem:[%s5154_s5] sm:$0xf] }
 0x389   :  { %3409 = vset.pattern.permute.xlu1 %v3596_v53 }
 0x38a   :  { %2786 = vperm.xlu0 %3413, %v2728_v22   ;;  %v2697_v56 = vpop.permute.xlu1 %2696  ;;  %2611 = vperm.xlu1 %3409, %v2549_v54   ;;  %v4955_v22 = vrot.slane %v1361_v41, %v2456_v20 }
 0x38b   :  { %v2337_v11 = vpop.permute.xlu0 %2336  ;;  %v2731_v32 = vmul.f32 %v5291_v55, %v2697_v56  ;;  %v5297_v56 = vld [vmem:[#allocation38_spill] sm:$0xff] }
 0x38c   :  { %v2371_v8 = vmul.f32 %v5287_v42, %v2337_v11 }
 0x38e   :  { %v2335_v7 = vpop.permute.xlu1 %2334  ;;  %3410 = vset.pattern.permute.xlu1 %v3597_v24  ;;  %3417 = vset.pattern.permute.xlu0 %v3595_v60 }
 0x38f   :  { %v2370_v43 = vmul.f32 %v5284_v10, %v2335_v7  ;;  %v4921_v51 = vpop.permute.xlu0 %2261  ;;  %2791 = vperm.xlu1 %3410, %v2729_v5   ;;  %v5298_v5 = vld [vmem:[#allocation3_spill] sm:$0xff] }
 0x390   :  { %v4960_v7 = vrot.slane %v1361_v41, %v5298_v5 }
 0x391   :  { %2436 = vperm.xlu0 %3417, %v2370_v43   ;;  %v2816_v43 = vsub.s32 3, %v5296_v3 }
 0x392   :  { %v4924_v4 = vpop.permute.xlu1 %2256 }
 0x393   :  { %v2515_v40 = vpop.permute.xlu0 %2514  ;;  %3412 = vset.pattern.permute.xlu1 %v3596_v53 }
 0x394   :  { %v2550_v12 = vmul.f32 %v5286_v0, %v2515_v40  ;;  %2606 = vperm.xlu1 %3412, %v2548_v15   ;;  %v2278_v15 = vmul.f32 %v4960_v7, %v4838_v21  ;;  %v4969_v0 = vrot.slane %v1361_v41, %v2816_v43 }
 0x395   :  { %3418 = vset.pattern.permute.xlu0 %v3596_v53 }
 0x396   :  { %v2521_v18 = vpop.permute.xlu1 %2520  ;;  %2616 = vperm.xlu0 %3418, %v2550_v12  }
 0x397   :  { %v2695_v17 = vpop.permute.xlu0 %2694  ;;  %v2553_v63 = vmul.f32 %v5294_v36, %v2521_v18 }
 0x398   :  { %3414 = vset.pattern.permute.xlu1 %v3595_v60  ;;  %v2730_v23 = vmul.f32 %v5288_v47, %v2695_v17 }
 0x399   :  { %2441 = vperm.xlu1 %3414, %v2371_v8  }
 0x39a   :  { %v2701_v46 = vpop.permute.xlu1 %2700  ;;  %3419 = vset.pattern.permute.xlu0 %v3597_v24 }
 0x39b   :  { %v2341_v28 = vpop.permute.xlu0 %2340  ;;  %2796 = vperm.xlu0 %3419, %v2730_v23   ;;  %v2733_v11 = vmul.f32 %v5297_v56, %v2701_v46 }
 0x39c   :  { %v2373_v9 = vmul.f32 %v5292_v48, %v2341_v28  ;;  %v5300_v48 = vld [vmem:[#allocation5_spill] sm:$0xff] }
 0x39d   :  { %3415 = vset.pattern.permute.xlu1 %v3596_v53 }
 0x39e   :  { %v2339_v39 = vpop.permute.xlu1 %2338  ;;  %2621 = vperm.xlu1 %3415, %v2551_v35  }
 0x39f   :  { %v2372_v61 = vmul.f32 %v5290_v27, %v2339_v39  ;;  %v4936_v14 = vpop.permute.xlu0 %2271  ;;  %3422 = vset.pattern.permute.xlu0 %v3595_v60 }
 0x3a1   :  { %2446 = vperm.xlu0 %3422, %v2372_v61   ;;  %v5299_v61 = vld [vmem:[#allocation4_spill] sm:$0xff] }
 0x3a2   :  { %3416 = vset.pattern.permute.xlu1 %v3597_v24  ;;  %v4943_v26 = vpop.permute.xlu1 %2266 }
 0x3a3   :  { %v2519_v50 = vpop.permute.xlu0 %2518  ;;  %2801 = vperm.xlu1 %3416, %v2731_v32   ;;  %v2279_v32 = vmul.f32 %v4960_v7, %v4832_v52 }
 0x3a4   :  { %v2552_v19 = vmul.f32 %v5295_v33, %v2519_v50 }
 0x3a5   :  { %3424 = vset.pattern.permute.xlu0 %v3597_v24 }
 0x3a7   :  { %v2699_v2 = vpop.permute.xlu0 %2698  ;;  %3420 = vset.pattern.permute.xlu1 %v3595_v60  ;;  %v2562_v37 = vpop.permute.xlu1 %2561  ;;  %v2636_v60 = vsub.s32 2, %v5296_v3 }
 0x3a8   :  { %v2732_v30 = vmul.f32 %v5293_v16, %v2699_v2  ;;  %2451 = vperm.xlu1 %3420, %v2373_v9  }
 0x3a9   :  { %v4962_v10 = vrot.slane %v1361_v41, %v2636_v60 }
 0x3aa   :  { %2806 = vperm.xlu0 %3424, %v2732_v30  }
 0x3ab   :  { %v2382_v49 = vpop.permute.xlu0 %2381  ;;  %v2639_v33 = vmul.f32 %v4962_v10, %v2562_v37  ;;  %v2283_v37 = vmul.f32 %v4960_v7, %v4860_v59  ;;  %v2282_v59 = vmul.f32 %v4960_v7, %v4864_v6 }
 0x3ac   :  { %3421 = vset.pattern.permute.xlu1 %v3596_v53 }
 0x3ad   :  { %2631 = vperm.xlu1 %3421, %v2553_v63   ;;  %v2280_v63 = vmul.f32 %v4960_v7, %v4850_v57 }
 0x3b0   :  { %v2742_v31 = vpop.permute.xlu0 %2741  ;;  %v2377_v54 = vpop.permute.xlu1 %2376 }
 0x3b1   :  { %2626 = vperm.xlu1 %3421, %v2552_v19   ;;  %v2458_v62 = vmul.f32 %v4955_v22, %v2377_v54  ;;  %v2819_v3 = vmul.f32 %v4969_v0, %v2742_v31 }
 0x3b3   :  { %v2474_v12 = vadd.f32 %v2458_v62, %v2278_v15 }
 0x3b5   :  { %v2557_v45 = vpop.permute.xlu0 %2556  ;;  %v2737_v53 = vpop.permute.xlu1 %2736  ;;  %3423 = vset.pattern.permute.xlu1 %v3597_v24  ;;  %v2281_v24 = vmul.f32 %v4960_v7, %v4847_v13  ;;  %v2459_v13 = vmul.f32 %v4955_v22, %v2382_v49 }
 0x3b6   :  { %2811 = vperm.xlu1 %3423, %v2733_v11   ;;  %v2638_v40 = vmul.f32 %v4962_v10, %v2557_v45  ;;  %v2818_v47 = vmul.f32 %v4969_v0, %v2737_v53 }
 0x3b7   :  { %v2475_v2 = vadd.f32 %v2459_v13, %v2279_v32  ;;  %v2285_v32 = vmul.f32 %v4960_v7, %v4876_v34  ;;  %v2284_v34 = vmul.f32 %v4960_v7, %v4880_v38  ;;  %v2287_v38 = vmul.f32 %v4960_v7, %v4891_v29 }
 0x3b8   :  { %v2654_v17 = vadd.f32 %v2638_v40, %v2474_v12 }
 0x3b9   :  { %v2572_v42 = vpop.permute.xlu0 %2571  ;;  %v2655_v52 = vadd.f32 %v2639_v33, %v2475_v2 }
 0x3ba   :  { %v2392_v18 = vpop.permute.xlu1 %2391  ;;  %v2641_v46 = vmul.f32 %v4962_v10, %v2572_v42  ;;  %v2834_v21 = vadd.f32 %v2818_v47, %v2654_v17 }
 0x3bb   :  { %v2461_v8 = vmul.f32 %v4955_v22, %v2392_v18  ;;  %v2835_v11 = vadd.f32 %v2819_v3, %v2655_v52  ;;  %v5302_v3 = vld [vmem:[#allocation8_spill] sm:$0xff] }
 0x3bc   :  { %v2850_v55 = vmul.f32 %v2834_v21, %v5299_v61 }
 0x3bd   :  { %v2477_v23 = vadd.f32 %v2461_v8, %v2281_v24  ;;  %v2851_v62 = vmul.f32 %v2835_v11, %v5299_v61 }
 0x3be   :  { %v2866_v50 = vsel %vm182_vm0, %v2850_v55, 0.0 }
 0x3bf   :  { %v2752_v28 = vpop.permute.xlu1 %2751  ;;  %v2657_v44 = vadd.f32 %v2641_v46, %v2477_v23  ;;  %v2869_v8 = vsel %vm182_vm0, %v2851_v62, 0.0  ;;  %v5301_v46 = vld [vmem:[#allocation6_spill] sm:$0xff] }
 0x3c0   :  { %v2821_v35 = vmul.f32 %v4969_v0, %v2752_v28 }
 0x3c2   :  { %v2837_v39 = vadd.f32 %v2821_v35, %v2657_v44 }
 0x3c4   :  { %v2387_v27 = vpop.permute.xlu1 %2386  ;;  %v2853_v9 = vmul.f32 %v2837_v39, %v5300_v48  ;;  %v2582_v30 = vpop.permute.xlu0 %2581 }
 0x3c5   :  { %v2460_v16 = vmul.f32 %v4955_v22, %v2387_v27  ;;  %v2643_v15 = vmul.f32 %v4962_v10, %v2582_v30 }
 0x3c6   :  { %v2875_v19 = vsel %vm182_vm0, %v2853_v9, 0.0 }
 0x3c7   :  { %v2476_v20 = vadd.f32 %v2460_v16, %v2280_v63 }
 0x3c9   :  { %2867 = vadd.xlane.f32.xlu0 %v2866_v50  ;;  %v2567_v36 = vpop.permute.xlu1 %2566  ;;  %v2762_v41 = vpop.permute.xlu0 %2761 }
 0x3ca   :  { %v2640_v49 = vmul.f32 %v4962_v10, %v2567_v36  ;;  %v2823_v12 = vmul.f32 %v4969_v0, %v2762_v41 }
 0x3cc   :  { %v2656_v60 = vadd.f32 %v2640_v49, %v2476_v20 }
 0x3cd   :  { %2876 = vadd.xlane.f32.xlu0 %v2875_v19 }
 0x3ce   :  { %v2747_v54 = vpop.permute.xlu1 %2746  ;;  %v2397_v43 = vpop.permute.xlu0 %2396 }
 0x3cf   :  { %v2820_v56 = vmul.f32 %v4969_v0, %v2747_v54  ;;  %v2462_v18 = vmul.f32 %v4955_v22, %v2397_v43 }
 0x3d1   :  { %v2836_v45 = vadd.f32 %v2820_v56, %v2656_v60  ;;  %v2478_v23 = vadd.f32 %v2462_v18, %v2282_v59  ;;  %v2286_v18 = vmul.f32 %v4960_v7, %v4895_v58 }
 0x3d3   :  { %v2402_v53 = vpop.permute.xlu1 %2401  ;;  %v2852_v57 = vmul.f32 %v2836_v45, %v5300_v48 }
 0x3d4   :  { %v2463_v5 = vmul.f32 %v4955_v22, %v2402_v53  ;;  %v2592_v21 = vpop.permute.xlu0 %2591 }
 0x3d5   :  { %v2872_v31 = vsel %vm182_vm0, %v2852_v57, 0.0  ;;  %v2645_v9 = vmul.f32 %v4962_v10, %v2592_v21 }
 0x3d6   :  { %v2479_v40 = vadd.f32 %v2463_v5, %v2283_v37  ;;  %2873 = vadd.xlane.f32.xlu0 %v2872_v31 }
 0x3d8   :  { %v2659_v24 = vadd.f32 %v2643_v15, %v2479_v40  ;;  %v2577_v42 = vpop.permute.xlu1 %2576 }
 0x3d9   :  { %v2642_v17 = vmul.f32 %v4962_v10, %v2577_v42 }
 0x3da   :  { %2870 = vadd.xlane.f32.xlu1 %v2869_v8  ;;  %v2839_v47 = vadd.f32 %v2823_v12, %v2659_v24 }
 0x3db   :  { %v2658_v35 = vadd.f32 %v2642_v17, %v2478_v23 }
 0x3dc   :  { %v2855_v28 = vmul.f32 %v2839_v47, %v5301_v46  ;;  %v2407_v55 = vpop.permute.xlu0 %2406 }
 0x3dd   :  { %v2757_v44 = vpop.permute.xlu1 %2756  ;;  %v2464_v33 = vmul.f32 %v4955_v22, %v2407_v55 }
 0x3de   :  { %v2822_v39 = vmul.f32 %v4969_v0, %v2757_v44  ;;  %v2881_v27 = vsel %vm182_vm0, %v2855_v28, 0.0 }
 0x3df   :  { %2882 = vadd.xlane.f32.xlu0 %v2881_v27  ;;  %v2480_v54 = vadd.f32 %v2464_v33, %v2284_v34 }
 0x3e0   :  { %v2838_v61 = vadd.f32 %v2822_v39, %v2658_v35 }
 0x3e2   :  { %v2412_v13 = vpop.permute.xlu1 %2411  ;;  %v2854_v6 = vmul.f32 %v2838_v61, %v5301_v46  ;;  %v5303_v46 = vld [vmem:[#allocation7_spill] sm:$0xff] }
 0x3e3   :  { %v2465_v50 = vmul.f32 %v4955_v22, %v2412_v13  ;;  %v2289_v13 = vmul.f32 %v4960_v7, %v4906_v1 }
 0x3e4   :  { %v2878_v48 = vsel %vm182_vm0, %v2854_v6, 0.0 }
 0x3e5   :  { %v2481_v2 = vadd.f32 %v2465_v50, %v2285_v32  ;;  %v2767_v16 = vpop.permute.xlu0 %2766  ;;  %2879 = vadd.xlane.f32.xlu1 %v2878_v48 }
 0x3e6   :  { %v2824_v56 = vmul.f32 %v4969_v0, %v2767_v16 }
 0x3e7   :  { %v2772_v30 = vpop.permute.xlu1 %2771  ;;  %v2661_v36 = vadd.f32 %v2645_v9, %v2481_v2 }
 0x3e8   :  { %v2825_v63 = vmul.f32 %v4969_v0, %v2772_v30 }
 0x3e9   :  { %v2782_v49 = vpop.permute.xlu0 %2781 }
 0x3ea   :  { %v2841_v19 = vadd.f32 %v2825_v63, %v2661_v36  ;;  %v2827_v42 = vmul.f32 %v4969_v0, %v2782_v49  ;;  %v2288_v63 = vmul.f32 %v4960_v7, %v4909_v25  ;;  %v5304_v49 = vld [vmem:[#allocation9_spill] sm:$0xff] }
 0x3ec   :  { %v2587_v52 = vpop.permute.xlu1 %2586  ;;  %v2857_v20 = vmul.f32 %v2841_v19, %v5302_v3 }
 0x3ed   :  { %v2644_v60 = vmul.f32 %v4962_v10, %v2587_v52 }
 0x3ee   :  { %v2887_v41 = vsel %vm182_vm0, %v2857_v20, 0.0  ;;  %v2417_v45 = vpop.permute.xlu0 %2416 }
 0x3ef   :  { %v2660_v11 = vadd.f32 %v2644_v60, %v2480_v54  ;;  %2888 = vadd.xlane.f32.xlu0 %v2887_v41  ;;  %v2466_v62 = vmul.f32 %v4955_v22, %v2417_v45  ;;  %v2290_v41 = vmul.f32 %v4960_v7, %v4924_v4  ;;  %v2291_v4 = vmul.f32 %v4960_v7, %v4921_v51 }
 0x3f1   :  { %v2840_v53 = vadd.f32 %v2824_v56, %v2660_v11  ;;  %v2422_v57 = vpop.permute.xlu1 %2421  ;;  %v2482_v59 = vadd.f32 %v2466_v62, %v2286_v18 }
 0x3f2   :  { %v2467_v37 = vmul.f32 %v4955_v22, %v2422_v57 }
 0x3f3   :  { %v2856_v5 = vmul.f32 %v2840_v53, %v5302_v3  ;;  %v2597_v43 = vpop.permute.xlu0 %2596 }
 0x3f4   :  { %v2483_v40 = vadd.f32 %v2467_v37, %v2287_v38  ;;  %v2646_v24 = vmul.f32 %v4962_v10, %v2597_v43 }
 0x3f5   :  { %v2884_v31 = vsel %vm182_vm0, %v2856_v5, 0.0 }
 0x3f6   :  { %v2602_v15 = vpop.permute.xlu1 %2601  ;;  %2885 = vadd.xlane.f32.xlu1 %v2884_v31  ;;  %v2662_v47 = vadd.f32 %v2646_v24, %v2482_v59 }
 0x3f7   :  { %v2647_v12 = vmul.f32 %v4962_v10, %v2602_v15 }
 0x3f9   :  { %v2663_v8 = vadd.f32 %v2647_v12, %v2483_v40  ;;  %v5305_v40 = vld [vmem:[#allocation10_spill] sm:$0xff] }
 0x3fb   :  { %v2843_v29 = vadd.f32 %v2827_v42, %v2663_v8  ;;  %v2777_v17 = vpop.permute.xlu1 %2776 }
 0x3fc   :  { %v2826_v23 = vmul.f32 %v4969_v0, %v2777_v17  ;;  %v2427_v27 = vpop.permute.xlu0 %2426 }
 0x3fd   :  { %v2859_v28 = vmul.f32 %v2843_v29, %v5303_v46  ;;  %v2468_v16 = vmul.f32 %v4955_v22, %v2427_v27 }
 0x3fe   :  { %v2842_v21 = vadd.f32 %v2826_v23, %v2662_v47 }
 0x3ff   :  { %v2893_v44 = vsel %vm182_vm0, %v2859_v28, 0.0  ;;  %v2484_v34 = vadd.f32 %v2468_v16, %v2288_v63 }
 0x400   :  { %v2432_v35 = vpop.permute.xlu1 %2431  ;;  %2894 = vadd.xlane.f32.xlu0 %v2893_v44  ;;  %v2858_v58 = vmul.f32 %v2842_v21, %v5303_v46  ;;  %v2292_v21 = vmul.f32 %v4960_v7, %v4943_v26 }
 0x401   :  { %v2469_v61 = vmul.f32 %v4955_v22, %v2432_v35 }
 0x402   :  { %v2890_v39 = vsel %vm182_vm0, %v2858_v58, 0.0 }
 0x403   :  { %2891 = vadd.xlane.f32.xlu1 %v2890_v39  ;;  %v2485_v50 = vadd.f32 %v2469_v61, %v2289_v13  ;;  %v2293_v61 = vmul.f32 %v4960_v7, %v4936_v14 }
 0x405   :  { %v2612_v55 = vpop.permute.xlu1 %2611  ;;  %v2787_v32 = vpop.permute.xlu0 %2786 }
 0x406   :  { %v2649_v6 = vmul.f32 %v4962_v10, %v2612_v55  ;;  %v2828_v54 = vmul.f32 %v4969_v0, %v2787_v32 }
 0x408   :  { %v2665_v9 = vadd.f32 %v2649_v6, %v2485_v50 }
 0x40a   :  { %v2792_v48 = vpop.permute.xlu1 %2791 }
 0x40b   :  { %v2829_v2 = vmul.f32 %v4969_v0, %v2792_v48 }
 0x40c   :  { %v2437_v30 = vpop.permute.xlu0 %2436 }
 0x40d   :  { %v2845_v36 = vadd.f32 %v2829_v2, %v2665_v9  ;;  %v2470_v52 = vmul.f32 %v4955_v22, %v2437_v30 }
 0x40f   :  { %v2607_v33 = vpop.permute.xlu1 %2606  ;;  %v2861_v19 = vmul.f32 %v2845_v36, %v5304_v49  ;;  %v2486_v45 = vadd.f32 %v2470_v52, %v2290_v41  ;;  %v2915_v52 = vld [vmem:[%s5155_s3 + $0x8] sm:$0xff]  ;;  %v2916_v41 = vld [vmem:[%s5155_s3 + $0x10] sm:$0xff] }
 0x410   :  { %v2648_v1 = vmul.f32 %v4962_v10, %v2607_v33 }
 0x411   :  { %v2617_v3 = vpop.permute.xlu0 %2616  ;;  %v2899_v20 = vsel %vm182_vm0, %v2861_v19, 0.0 }
 0x412   :  { %v2664_v60 = vadd.f32 %v2648_v1, %v2484_v34  ;;  %2900 = vadd.xlane.f32.xlu0 %v2899_v20  ;;  %v2650_v25 = vmul.f32 %v4962_v10, %v2617_v3  ;;  %v2914_v3 = vld [vmem:[%s5155_s3] sm:$0xff] }
 0x413   :  { %v2918_v20 = vld [vmem:[%s5155_s3 + $0x20] sm:$0xff] }
 0x414   :  { %v2844_v56 = vadd.f32 %v2828_v54, %v2664_v60  ;;  %v2442_v11 = vpop.permute.xlu1 %2441  ;;  %v2666_v37 = vadd.f32 %v2650_v25, %v2486_v45  ;;  %v2922_v45 = vld [vmem:[%s5155_s3 + $0x40] sm:$0xff] }
 0x415   :  { %v2471_v43 = vmul.f32 %v4955_v22, %v2442_v11  ;;  %v2919_v11 = vld [vmem:[%s5155_s3 + $0x28] sm:$0xff] }
 0x416   :  { %v2797_v53 = vpop.permute.xlu0 %2796  ;;  %v2860_v57 = vmul.f32 %v2844_v56, %v5304_v49  ;;  %v2920_v56 = vld [vmem:[%s5155_s3 + $0x30] sm:$0xff] }
 0x417   :  { %v2830_v5 = vmul.f32 %v4969_v0, %v2797_v53  ;;  %v2487_v18 = vadd.f32 %v2471_v43, %v2291_v4 }
 0x418   :  { %v2896_v38 = vsel %vm182_vm0, %v2860_v57, 0.0  ;;  %v2917_v57 = vld [vmem:[%s5155_s3 + $0x18] sm:$0xff] }
 0x419   :  { %v2846_v31 = vadd.f32 %v2830_v5, %v2666_v37  ;;  %v2622_v62 = vpop.permute.xlu1 %2621  ;;  %2897 = vadd.xlane.f32.xlu1 %v2896_v38  ;;  %v2921_v5 = vld [vmem:[%s5155_s3 + $0x38] sm:$0xff]  ;;  %v2924_v38 = vld [vmem:[%s5155_s3 + $0x50] sm:$0xff] }
 0x41a   :  { %v2651_v15 = vmul.f32 %v4962_v10, %v2622_v62  ;;  %v2923_v62 = vld [vmem:[%s5155_s3 + $0x48] sm:$0xff] }
 0x41b   :  { %v2862_v12 = vmul.f32 %v2846_v31, %v5305_v40 }
 0x41c   :  { %v2667_v8 = vadd.f32 %v2651_v15, %v2487_v18  ;;  %v2447_v46 = vpop.permute.xlu0 %2446  ;;  %v2925_v18 = vld [vmem:[%s5155_s3 + $0x58] sm:$0xff] }
 0x41d   :  { %v2902_v24 = vsel %vm182_vm0, %v2862_v12, 0.0  ;;  %v2472_v28 = vmul.f32 %v4955_v22, %v2447_v46 }
 0x41e   :  { %v2802_v42 = vpop.permute.xlu1 %2801  ;;  %2903 = vadd.xlane.f32.xlu1 %v2902_v24 }
 0x41f   :  { %v2831_v59 = vmul.f32 %v4969_v0, %v2802_v42  ;;  %v2488_v39 = vadd.f32 %v2472_v28, %v2292_v21 }
 0x421   :  { %v2847_v29 = vadd.f32 %v2831_v59, %v2667_v8  ;;  %v2926_v59 = vld [vmem:[%s5155_s3 + $0x60] sm:$0xff] }
 0x423   :  { %v2452_v17 = vpop.permute.xlu1 %2451  ;;  %v2863_v47 = vmul.f32 %v2847_v29, %v5305_v40 }
 0x424   :  { %v2473_v44 = vmul.f32 %v4955_v22, %v2452_v17  ;;  %v5306_v22 = vld [vmem:[#allocation11_spill] sm:$0xff] }
 0x425   :  { %v2905_v23 = vsel %vm182_vm0, %v2863_v47, 0.0  ;;  %v2807_v35 = vpop.permute.xlu0 %2806  ;;  %v2927_v17 = vld [vmem:[%s5155_s3 + $0x68] sm:$0xff] }
 0x426   :  { %2906 = vadd.xlane.f32.xlu0 %v2905_v23  ;;  %v2832_v13 = vmul.f32 %v4969_v0, %v2807_v35  ;;  %v2489_v32 = vadd.f32 %v2473_v44, %v2293_v61 }
 0x428   :  { %v2632_v51 = vpop.permute.xlu1 %2631 }
 0x429   :  { %v2653_v55 = vmul.f32 %v4962_v10, %v2632_v51 }
 0x42b   :  { %v2669_v9 = vadd.f32 %v2653_v55, %v2489_v32 }
 0x42c   :  { %v2627_v58 = vpop.permute.xlu1 %2626 }
 0x42d   :  { %v2652_v27 = vmul.f32 %v4962_v10, %v2627_v58 }
 0x42f   :  { %v2668_v6 = vadd.f32 %v2652_v27, %v2488_v39 }
 0x431   :  { %v2848_v50 = vadd.f32 %v2832_v13, %v2668_v6  ;;  %v2812_v48 = vpop.permute.xlu1 %2811 }
 0x432   :  { %v2833_v26 = vmul.f32 %v4969_v0, %v2812_v48 }
 0x433   :  { %v2864_v2 = vmul.f32 %v2848_v50, %v5306_v22 }
 0x434   :  { %v2849_v16 = vadd.f32 %v2833_v26, %v2669_v9 }
 0x435   :  { %v2908_v30 = vsel %vm182_vm0, %v2864_v2, 0.0 }
 0x436   :  { %2909 = vadd.xlane.f32.xlu1 %v2908_v30  ;;  %v2865_v36 = vmul.f32 %v2849_v16, %v5306_v22 }
 0x438   :  { %v2911_v14 = vsel %vm182_vm0, %v2865_v36, 0.0 }
 0x439   :  { %2912 = vadd.xlane.f32.xlu0 %v2911_v14 }
 0x452   :  { %v2868_v7 = vpop.xlane.xlu0 %2867 }
 0x453   :  { %v2930_v53 = vmul.f32 %v2914_v3, %v2868_v7 }
 0x455   :  { %v2946_v47 = vsel %vm182_vm0, %v2930_v53, 0.0 }
 0x456   :  { %v2877_v10 = vpop.xlane.xlu0 %2876 }
 0x457   :  { %v2933_v24 = vmul.f32 %v2917_v57, %v2877_v10 }
 0x459   :  { %v2956_v55 = vsel %vm182_vm0, %v2933_v24, 0.0 }
 0x45f   :  { %v2874_v33 = vpop.xlane.xlu0 %2873 }
 0x460   :  { %v2932_v43 = vmul.f32 %v2916_v41, %v2874_v33 }
 0x462   :  { %v2955_v51 = vsel %vm182_vm0, %v2932_v43, 0.0 }
 0x463   :  { %v2871_v63 = vpop.xlane.xlu1 %2870  ;;  %v2957_v50 = vadd.f32 %v2956_v55, %v2955_v51 }
 0x464   :  { %v2931_v25 = vmul.f32 %v2915_v52, %v2871_v63 }
 0x465   :  { %v2958_v10 = vrot.slane %v2957_v50, 4 }
 0x466   :  { %v2947_v15 = vsel %vm182_vm0, %v2931_v25, 0.0 }
 0x467   :  { %v2948_v28 = vadd.f32 %v2947_v15, %v2946_v47 }
 0x468   :  { %v2883_v19 = vpop.xlane.xlu0 %2882 }
 0x469   :  { %v2935_v40 = vmul.f32 %v2919_v11, %v2883_v19  ;;  %v2949_v16 = vrot.slane %v2948_v28, 4  ;;  %v2928_v11 = vld [vmem:[%s5155_s3 + $0x70] sm:$0xff] }
 0x46b   :  { %v2965_v58 = vsel %vm182_vm0, %v2935_v40, 0.0 }
 0x46e   :  { %v2880_v49 = vpop.xlane.xlu1 %2879 }
 0x46f   :  { %v2934_v37 = vmul.f32 %v2918_v20, %v2880_v49  ;;  %v2950_v49 = vadd.f32 %v2949_v16, %v2948_v28 }
 0x471   :  { %v2964_v23 = vsel %vm182_vm0, %v2934_v37, 0.0  ;;  %v2951_v20 = vrot.slane %v2950_v49, 2 }
 0x472   :  { %v2966_v13 = vadd.f32 %v2965_v58, %v2964_v23 }
 0x473   :  { %v2952_v57 = vadd.f32 %v2951_v20, %v2950_v49 }
 0x474   :  { %v2967_v14 = vrot.slane %v2966_v13, 4 }
 0x478   :  { %v2889_v1 = vpop.xlane.xlu0 %2888 }
 0x479   :  { %v2937_v42 = vmul.f32 %v2921_v5, %v2889_v1  ;;  %v2929_v5 = vld [vmem:[%s5155_s3 + $0x78] sm:$0xff] }
 0x47b   :  { %v2974_v6 = vsel %vm182_vm0, %v2937_v42, 0.0 }
 0x47f   :  { %v2886_v34 = vpop.xlane.xlu1 %2885 }
 0x480   :  { %v2936_v31 = vmul.f32 %v2920_v56, %v2886_v34  ;;  %v2968_v34 = vadd.f32 %v2967_v14, %v2966_v13 }
 0x482   :  { %v2973_v21 = vsel %vm182_vm0, %v2936_v31, 0.0 }
 0x483   :  { %v2975_v48 = vadd.f32 %v2974_v6, %v2973_v21 }
 0x485   :  { %v2976_v63 = vrot.slane %v2975_v48, 4 }
 0x487   :  { %v2977_v52 = vadd.f32 %v2976_v63, %v2975_v48 }
 0x489   :  { %v2895_v54 = vpop.xlane.xlu0 %2894  ;;  %v2978_v56 = vrot.slane %v2977_v52, 2 }
 0x48a   :  { %v2939_v46 = vmul.f32 %v2923_v62, %v2895_v54 }
 0x48c   :  { %v2892_v0 = vpop.xlane.xlu1 %2891  ;;  %v2983_v9 = vsel %vm182_vm0, %v2939_v46, 0.0 }
 0x48d   :  { %v2938_v12 = vmul.f32 %v2922_v45, %v2892_v0  ;;  %v2959_v0 = vadd.f32 %v2958_v10, %v2957_v50 }
 0x48f   :  { %v2982_v39 = vsel %vm182_vm0, %v2938_v12, 0.0  ;;  %v2960_v25 = vrot.slane %v2959_v0, 2 }
 0x490   :  { %v2984_v22 = vadd.f32 %v2983_v9, %v2982_v39 }
 0x491   :  { %v2961_v62 = vadd.f32 %v2960_v25, %v2959_v0 }
 0x492   :  { %v2985_v33 = vrot.slane %v2984_v22, 4 }
 0x494   :  { %v2986_v3 = vadd.f32 %v2985_v33, %v2984_v22  ;;  %v3586_v33 = vld [vmem:[%s5151_s0] sm:$0xff] }
 0x495   :  { %v3018_v49 = vmul.f32 0.7, %v3586_v33 }
 0x496   :  { %v2987_v45 = vrot.slane %v2986_v3, 2 }
 0x498   :  { %v2988_v40 = vadd.f32 %v2987_v45, %v2986_v3 }
 0x49a   :  { %v2989_v46 = vrot.slane %v2988_v40, 1 }
 0x49b   :  { %v2901_v4 = vpop.xlane.xlu0 %2900 }
 0x49c   :  { %v2941_v44 = vmul.f32 %v2925_v18, %v2901_v4  ;;  %v2979_v4 = vadd.f32 %v2978_v56, %v2977_v52  ;;  %v2953_v18 = vrot.slane %v2952_v57, 1 }
 0x49e   :  { %v2992_v2 = vsel %vm182_vm0, %v2941_v44, 0.0  ;;  %v2980_v47 = vrot.slane %v2979_v4, 1  ;;  %v2954_v51 = vadd.f32 %v2953_v18, %v2952_v57 }
 0x4a0   :  { %v2981_v39 = vadd.f32 %v2980_v47, %v2979_v4  ;;  %v3019_v55 = vmul.f32 0.3, %v2954_v51 }
 0x4a2   :  { %v2898_v60 = vpop.xlane.xlu1 %2897  ;;  %v3022_v9 = vmul.f32 0.3, %v2981_v39 }
 0x4a3   :  { %v2940_v8 = vmul.f32 %v2924_v38, %v2898_v60  ;;  %v2969_v60 = vrot.slane %v2968_v34, 2 }
 0x4a5   :  { %v2991_v32 = vsel %vm182_vm0, %v2940_v8, 0.0  ;;  %v2970_v38 = vadd.f32 %v2969_v60, %v2968_v34 }
 0x4a6   :  { %v2993_v30 = vadd.f32 %v2992_v2, %v2991_v32 }
 0x4a7   :  { %v2904_v29 = vpop.xlane.xlu1 %2903  ;;  %v2971_v42 = vrot.slane %v2970_v38, 1 }
 0x4a8   :  { %v2942_v27 = vmul.f32 %v2926_v59, %v2904_v29  ;;  %v2994_v19 = vrot.slane %v2993_v30, 4 }
 0x4a9   :  { %v2972_v44 = vadd.f32 %v2971_v42, %v2970_v38 }
 0x4aa   :  { %v3000_v36 = vsel %vm182_vm0, %v2942_v27, 0.0  ;;  %v2995_v54 = vadd.f32 %v2994_v19, %v2993_v30 }
 0x4ab   :  { %v3021_v32 = vmul.f32 0.3, %v2972_v44 }
 0x4ac   :  { %v2996_v37 = vrot.slane %v2995_v54, 2 }
 0x4ae   :  { %v2997_v24 = vadd.f32 %v2996_v37, %v2995_v54 }
 0x4af   :  { %v2907_v35 = vpop.xlane.xlu0 %2906 }
 0x4b0   :  { %v2943_v61 = vmul.f32 %v2927_v17, %v2907_v35  ;;  %v2962_v17 = vrot.slane %v2961_v62, 1  ;;  %v2998_v28 = vrot.slane %v2997_v24, 1 }
 0x4b2   :  { %v3001_v26 = vsel %vm182_vm0, %v2943_v61, 0.0  ;;  %v2963_v58 = vadd.f32 %v2962_v17, %v2961_v62  ;;  %v2990_v61 = vadd.f32 %v2989_v46, %v2988_v40  ;;  %v2999_v13 = vadd.f32 %v2998_v28, %v2997_v24 }
 0x4b3   :  { %v3002_v7 = vadd.f32 %v3001_v26, %v3000_v36 }
 0x4b4   :  { %v3020_v48 = vmul.f32 0.3, %v2963_v58  ;;  %v3023_v22 = vmul.f32 0.3, %v2990_v61  ;;  %v3024_v16 = vmul.f32 0.3, %v2999_v13 }
 0x4b5   :  { %v3003_v1 = vrot.slane %v3002_v7, 4 }
 0x4b6   :  { %v3036_v2 = vsel %vm3035_vm1, %v3020_v48, %v3019_v55 }
 0x4b7   :  { %v3004_v41 = vadd.f32 %v3003_v1, %v3002_v7  ;;  %v3038_v36 = vsel %vm3037_vm2, %v3021_v32, %v3036_v2 }
 0x4b8   :  { %v3040_v7 = vsel %vm3039_vm3, %v3022_v9, %v3038_v36 }
 0x4b9   :  { %v3005_v43 = vrot.slane %v3004_v41, 2  ;;  %v3042_v63 = vsel %vm3041_vm4, %v3023_v22, %v3040_v7 }
 0x4ba   :  { %v3044_v19 = vsel %vm3043_vm5, %v3024_v16, %v3042_v63 }
 0x4bb   :  { %v3006_v8 = vadd.f32 %v3005_v43, %v3004_v41 }
 0x4bd   :  { %v3007_v35 = vrot.slane %v3006_v8, 1 }
 0x4bf   :  { %v2910_v53 = vpop.xlane.xlu1 %2909  ;;  %v3008_v50 = vadd.f32 %v3007_v35, %v3006_v8 }
 0x4c0   :  { %v2944_v31 = vmul.f32 %v2928_v11, %v2910_v53 }
 0x4c1   :  { %v3025_v14 = vmul.f32 0.3, %v3008_v50 }
 0x4c2   :  { %v2913_v15 = vpop.xlane.xlu0 %2912  ;;  %v3009_v59 = vsel %vm182_vm0, %v2944_v31, 0.0 }
 0x4c3   :  { %v2945_v12 = vmul.f32 %v2929_v5, %v2913_v15  ;;  %v3046_v1 = vsel %vm3045_vm6, %v3025_v14, %v3044_v19 }
 0x4c5   :  { %v3010_v29 = vsel %vm182_vm0, %v2945_v12, 0.0 }
 0x4c6   :  { %v3011_v23 = vadd.f32 %v3010_v29, %v3009_v59 }
 0x4c8   :  { %v3012_v21 = vrot.slane %v3011_v23, 4 }
 0x4ca   :  { %v3013_v27 = vadd.f32 %v3012_v21, %v3011_v23 }
 0x4cc   :  { %v3014_v6 = vrot.slane %v3013_v27, 2 }
 0x4ce   :  { %v3015_v26 = vadd.f32 %v3014_v6, %v3013_v27 }
 0x4d0   :  { %v3016_v30 = vrot.slane %v3015_v26, 1 }
 0x4d2   :  { %v3017_v10 = vadd.f32 %v3016_v30, %v3015_v26 }
 0x4d4   :  { %v3026_v34 = vmul.f32 0.3, %v3017_v10 }
 0x4d6   :  { %v3048_v0 = vsel %vm3047_vm7, %v3026_v34, %v3046_v1 }
 0x4d7   :  { %v3050_v52 = vadd.f32 %v3048_v0, %v3018_v49 }
 0x4d9   :  { %3051 = vst.msk [vmem:[%s5156_s6] sm:$0xff] %vm182_vm0, %v3050_v52 }

</bundles_post_ra>
